<compile_context>
chip_gen: v6e
topology: v6e:2x2x1
jax: 0.10.0
libtpu: 0.0.40
codegen_flags: <defaults>
</compile_context>

<pallas_src>
import math

import jax
import jax.numpy as jnp
from jax.experimental import pallas as pl
from jax.experimental.pallas import tpu as pltpu

_F32 = jnp.float32
# Stay comfortably under the 32 MiB default scoped-VMEM limit (v5e/v6e/v7x) for the
# resident-A path, including input/output double buffers.
_RESIDENT_VMEM_BUDGET = 24 * 1024 * 1024


# --------------------------------------------------------------------------------------
# Small helpers
# --------------------------------------------------------------------------------------
def _round_up(x, m):
    return ((x + m - 1) // m) * m


def _pad2(a, rows, cols):
    return jnp.pad(a, ((0, rows - a.shape[0]), (0, cols - a.shape[1])))


# --------------------------------------------------------------------------------------
# Resident-A kernel: whole cell in one invocation (A loaded into VMEM once).
# --------------------------------------------------------------------------------------
def _resident_kernel(a_ref, xh_ref, h_ref, w1_ref, whh_ref, b1_ref, bhh_ref, out_ref):
    fp = h_ref.shape[-1]
    a = a_ref[...]
    # One MXU pass over A for both X- and H-side aggregation: A @ [X|H]
    axh = jnp.dot(a, xh_ref[...], preferred_element_type=jnp.float32)
    # Fused gate matmul: (A@[X|H]) @ [Wxz|Wxr|Wxh ; Whz|Whr|0]  -> [Z_pre | R_pre | PX]
    g = jnp.dot(axh, w1_ref[...], preferred_element_type=jnp.float32) + b1_ref[...]
    z = jax.nn.sigmoid(g[:, :fp])
    r = jax.nn.sigmoid(g[:, fp:2 * fp])
    px = g[:, 2 * fp:]
    h = h_ref[...]
    hr = (h * r).astype(a.dtype)
    ahr = jnp.dot(a, hr, preferred_element_type=jnp.float32)
    ht = jnp.tanh(px + jnp.dot(ahr, whh_ref[...], preferred_element_type=jnp.float32)
                  + bhh_ref[...])
    out_ref[...] = h + (1.0 - z) * (ht - h)


# --------------------------------------------------------------------------------------
# Streamed stage 1: accumulate A @ [X|H] over K; on the last K block compute the fused
# gates, write the [Z|PX] slab and H*R.
# --------------------------------------------------------------------------------------
def _stage1_kernel(a_ref, xh_ref, h_ref, w1_ref, b1_ref, zpx_ref, hr_ref, acc_ref):
    k = pl.program_id(1)

    @pl.when(k == 0)
    def _init():
        acc_ref[...] = jnp.zeros_like(acc_ref)

    acc_ref[...] += jnp.dot(a_ref[...], xh_ref[...], preferred_element_type=jnp.float32)

    @pl.when(k == pl.num_programs(1) - 1)
    def _finalize():
        fp = hr_ref.shape[-1]
        g = jnp.dot(acc_ref[...], w1_ref[...],
                    preferred_element_type=jnp.float32) + b1_ref[...]
        z = jax.nn.sigmoid(g[:, :fp])
        r = jax.nn.sigmoid(g[:, fp:2 * fp])
        zpx_ref[...] = jnp.concatenate([z, g[:, 2 * fp:]], axis=-1)   # [Z | PX]
        hr_ref[...] = (h_ref[...] * r).astype(hr_ref.dtype)


# --------------------------------------------------------------------------------------
# Streamed stage 2: accumulate A @ (H*R) over K; on the last K block finish the candidate
# state and the GRU blend  H' = H + (1 - Z) * (H_tilde - H).
# --------------------------------------------------------------------------------------
def _stage2_kernel(a_ref, hr_ref, z_ref, px_ref, h_ref, whh_ref, bhh_ref, out_ref, acc_ref):
    k = pl.program_id(1)

    @pl.when(k == 0)
    def _init():
        acc_ref[...] = jnp.zeros_like(acc_ref)

    acc_ref[...] += jnp.dot(a_ref[...], hr_ref[...], preferred_element_type=jnp.float32)

    @pl.when(k == pl.num_programs(1) - 1)
    def _finalize():
        ht = jnp.tanh(px_ref[...]
                      + jnp.dot(acc_ref[...], whh_ref[...],
                                preferred_element_type=jnp.float32)
                      + bhh_ref[...])
        h = h_ref[...]
        out_ref[...] = h + (1.0 - z_ref[...]) * (ht - h)


# --------------------------------------------------------------------------------------
# Planning: resident vs streamed, tile sizes, padded node count.
# --------------------------------------------------------------------------------------
def _resident_bytes(n_pad, fin_p, fout_p, mm_bytes):
    a = n_pad * n_pad * mm_bytes
    xh = n_pad * (fin_p + fout_p) * mm_bytes
    h = n_pad * fout_p * 4
    w = (fin_p + fout_p) * 3 * fout_p * 4 + fout_p * fout_p * 4
    out = n_pad * fout_p * 4
    interm = n_pad * (fin_p + 6 * fout_p) * 4          # A@[X|H], gates, HR, A@HR live values
    return 2 * (a + xh + h + w + out) + interm          # x2: input/output double buffers


def _plan(n, fin_p, fout_p, mm_bytes, path, tile):
    n128 = _round_up(n, 128)
    if path == "auto":
        path = ("resident"
                if _resident_bytes(n128, fin_p, fout_p, mm_bytes) <= _RESIDENT_VMEM_BUDGET
                else "streamed")
    if path == "resident":
        return "resident", n128, n128, n128
    if tile is not None:
        tm, tk = (tile, tile) if isinstance(tile, int) else tuple(tile)
    elif n128 >= 1024:
        tm = tk = 512                    # big tiles -> ~85% of HBM roofline on the A stream
    else:
        tk = n128
        tm = n128 // 2 if n128 >= 256 else n128   # >= 2 row tiles keeps both v7x TCs busy
    # Pad N up to the chosen tile (don't shrink the tile to whatever divides N).
    n_pad = _round_up(n128, math.lcm(tm, tk))
    return "streamed", n_pad, tm, tk


# --------------------------------------------------------------------------------------
# Step-invariant preparation (hoist out of the recurrent loop): padded/cast adjacency,
# fused & lane-padded gate weights / biases, and the execution plan.
# --------------------------------------------------------------------------------------
def prepare_step_invariants(a_hat, params, *, matmul_dtype=jnp.bfloat16, path="auto",
                            tile=None):
    """params: dict with keys wxz,bxz,whz,bhz,wxr,bxr,whr,bhr,wxh,bxh,whh,bhh.

    matmul_dtype feeds the [N,N]-sided MXU products (A, [X|H], H*R); accumulation and all
    gate math stay float32.  bfloat16 (default) halves the dominant HBM stream; float32
    keeps exact module semantics; a float8 dtype is a further v7x-only option.
    """
    fin = params["wxz"].shape[0]
    fout = params["wxz"].shape[1]
    fin_p = _round_up(fin, 128)
    fout_p = _round_up(fout, 128)

    def pw(w, rows):                                   # pad weight to [rows, fout_p]
        return _pad2(w.astype(_F32), rows, fout_p)

    def pb(b):                                         # pad bias to [1, fout_p]
        return _pad2(b.astype(_F32).reshape(1, -1), 1, fout_p)

    # Combined gate weight: g = (A@[X|H]) @ w1 + b1 yields [Z_pre | R_pre | PX] in one matmul.
    wx = jnp.concatenate([pw(params["wxz"], fin_p), pw(params["wxr"], fin_p),
                          pw(params["wxh"], fin_p)], axis=1)              # [fin_p, 3*fout_p]
    wh = jnp.concatenate([pw(params["whz"], fout_p), pw(params["whr"], fout_p),
                          jnp.zeros((fout_p, fout_p), _F32)], axis=1)     # [fout_p, 3*fout_p]
    w1 = jnp.concatenate([wx, wh], axis=0)                                # [fin_p+fout_p, 3*fout_p]
    b1 = jnp.concatenate([pb(params["bxz"]) + pb(params["bhz"]),
                          pb(params["bxr"]) + pb(params["bhr"]),
                          pb(params["bxh"])], axis=1)                     # [1, 3*fout_p]
    whh = pw(params["whh"], fout_p)
    bhh = pb(params["bhh"])

    n = a_hat.shape[0]
    mm_bytes = jnp.dtype(matmul_dtype).itemsize
    path, n_pad, tm, tk = _plan(n, fin_p, fout_p, mm_bytes, path, tile)
    a_p = _pad2(a_hat.astype(_F32), n_pad, n_pad).astype(matmul_dtype)

    return dict(a=a_p, w1=w1, b1=b1, whh=whh, bhh=bhh,
                n=n, n_pad=n_pad, tm=tm, tk=tk, path=path,
                fin=fin, fout=fout, fin_p=fin_p, fout_p=fout_p,
                matmul_dtype=matmul_dtype)


# --------------------------------------------------------------------------------------
# One GConvGRU step given the prepared invariants (cheap per-step glue only).
# --------------------------------------------------------------------------------------
def gconv_gru_cell(x, h, prep):
    n, n_pad = prep["n"], prep["n_pad"]
    fin_p, fout_p = prep["fin_p"], prep["fout_p"]
    fd = fin_p + fout_p
    mmdt = prep["matmul_dtype"]

    x_p = _pad2(x.astype(_F32), n_pad, fin_p)
    h_p = _pad2(h.astype(_F32), n_pad, fout_p)
    xh = jnp.concatenate([x_p, h_p], axis=1).astype(mmdt)     # matmul-side [X|H]

    if prep["path"] == "resident":
        h_new = pl.pallas_call(
            _resident_kernel,
            grid=(1,),
            in_specs=[
                pl.BlockSpec((n_pad, n_pad), lambda i: (0, 0)),        # A (resident)
                pl.BlockSpec((n_pad, fd), lambda i: (0, 0)),           # [X|H]
                pl.BlockSpec((n_pad, fout_p), lambda i: (0, 0)),       # H (f32)
                pl.BlockSpec((fd, 3 * fout_p), lambda i: (0, 0)),      # fused W1
                pl.BlockSpec((fout_p, fout_p), lambda i: (0, 0)),      # Whh
                pl.BlockSpec((1, 3 * fout_p), lambda i: (0, 0)),       # fused b1
                pl.BlockSpec((1, fout_p), lambda i: (0, 0)),           # bhh
            ],
            out_specs=pl.BlockSpec((n_pad, fout_p), lambda i: (0, 0)),
            out_shape=jax.ShapeDtypeStruct((n_pad, fout_p), _F32),
            compiler_params=pltpu.CompilerParams(dimension_semantics=("arbitrary",)),
        )(prep["a"], xh, h_p, prep["w1"], prep["whh"], prep["b1"], prep["bhh"])
        return h_new[:n, :prep["fout"]]

    # ---- streamed two-stage path (A tiled over rows x K; f32 accumulators) ----
    tm, tk = prep["tm"], prep["tk"]
    gm, gk = n_pad // tm, n_pad // tk
    cparams = pltpu.CompilerParams(dimension_semantics=("parallel", "arbitrary"))
    # Default tiles fit the 32 MiB default scoped VMEM on v5e/v6e/v7x; raise
    # vmem_limit_bytes (and shrink tiles on v7x's 64 MiB part) for tile=1024 / fout_p >= 512.

    zpx, hr = pl.pallas_call(
        _stage1_kernel,
        grid=(gm, gk),
        in_specs=[
            pl.BlockSpec((tm, tk), lambda i, k: (i, k)),              # A tile
            pl.BlockSpec((tk, fd), lambda i, k: (k, 0)),              # [X|H] (matmul side)
            pl.BlockSpec((tm, fout_p), lambda i, k: (i, 0)),          # H rows (elementwise)
            pl.BlockSpec((fd, 3 * fout_p), lambda i, k: (0, 0)),      # fused W1
            pl.BlockSpec((1, 3 * fout_p), lambda i, k: (0, 0)),       # fused b1
        ],
        out_specs=[
            pl.BlockSpec((tm, 2 * fout_p), lambda i, k: (i, 0)),      # [Z | PX] slab
            pl.BlockSpec((tm, fout_p), lambda i, k: (i, 0)),          # H*R
        ],
        out_shape=[
            jax.ShapeDtypeStruct((n_pad, 2 * fout_p), _F32),
            jax.ShapeDtypeStruct((n_pad, fout_p), mmdt),
        ],
        scratch_shapes=[pltpu.VMEM((tm, fd), _F32)],
        compiler_params=cparams,
    )(prep["a"], xh, h_p, prep["w1"], prep["b1"])

    h_new = pl.pallas_call(
        _stage2_kernel,
        grid=(gm, gk),
        in_specs=[
            pl.BlockSpec((tm, tk), lambda i, k: (i, k)),              # A tile
            pl.BlockSpec((tk, fout_p), lambda i, k: (k, 0)),          # H*R (matmul side)
            pl.BlockSpec((tm, fout_p), lambda i, k: (i, 0)),          # Z  (zpx col-block 0)
            pl.BlockSpec((tm, fout_p), lambda i, k: (i, 1)),          # PX (zpx col-block 1)
            pl.BlockSpec((tm, fout_p), lambda i, k: (i, 0)),          # H rows
            pl.BlockSpec((fout_p, fout_p), lambda i, k: (0, 0)),      # Whh
            pl.BlockSpec((1, fout_p), lambda i, k: (0, 0)),           # bhh
        ],
        out_specs=pl.BlockSpec((tm, fout_p), lambda i, k: (i, 0)),
        out_shape=jax.ShapeDtypeStruct((n_pad, fout_p), _F32),
        scratch_shapes=[pltpu.VMEM((tm, fout_p), _F32)],
        compiler_params=cparams,
    )(prep["a"], hr, zpx, zpx, h_p, prep["whh"], prep["bhh"])

    return h_new[:n, :prep["fout"]]


# Convenience single-shot wrapper (prefer prepare_step_invariants + gconv_gru_cell in loops).
def gconv_gru_pallas(a_hat, x, h, params, *, matmul_dtype=jnp.bfloat16, path="auto",
                     tile=None):
    prep = prepare_step_invariants(a_hat, params, matmul_dtype=matmul_dtype,
                                   path=path, tile=tile)
    return gconv_gru_cell(x, h, prep)


# --------------------------------------------------------------------------------------
# Plain-JAX glue: dense symmetric-normalized adjacency (PyG GCNConv normalization).
# TODO(synk): the sparse edge_index scatter itself has no clean Pallas equivalent; it is
# done once per graph in plain JAX outside the kernels.
# --------------------------------------------------------------------------------------
def normalized_adjacency(edge_index, edge_weight, num_nodes):
    src = edge_index[0]
    dst = edge_index[1]
    A = jnp.zeros((num_nodes, num_nodes), jnp.float32)
    A = A.at[dst, src].add(edge_weight)               # source_to_target flow
    A = A + jnp.eye(num_nodes, dtype=jnp.float32)     # add self loops
    deg = A.sum(axis=1)
    dinv = jnp.where(deg > 0.0, 1.0 / jnp.sqrt(deg), 0.0)
    return dinv[:, None] * A * dinv[None, :]


# --------------------------------------------------------------------------------------
# Deterministic parameter init (shapes from GConvGRU.__init__: 6x GCNConv with bias)
# --------------------------------------------------------------------------------------
def init_params(key, in_channels, out_channels):
    names = [("wxz", in_channels), ("whz", out_channels),
             ("wxr", in_channels), ("whr", out_channels),
             ("wxh", in_channels), ("whh", out_channels)]
    params = {}
    keys = jax.random.split(key, 2 * len(names))
    for i, (name, fin) in enumerate(names):
        scale = 1.0 / jnp.sqrt(jnp.float32(fin))
        params[name] = scale * jax.random.normal(keys[2 * i], (fin, out_channels), jnp.float32)
        params["b" + name[1:]] = 0.1 * jax.random.normal(keys[2 * i + 1], (1, out_channels),
                                                         jnp.float32)
    return params


# --------------------------------------------------------------------------------------
# Pure-JAX reference (original association A @ (X @ W) + b, for correctness check)
# --------------------------------------------------------------------------------------
def gconv_gru_ref(a_hat, x, h, p):
    def gcn(inp, w, b):
        return a_hat @ (inp @ w) + b
    Z = jax.nn.sigmoid(gcn(x, p["wxz"], p["bxz"]) + gcn(h, p["whz"], p["bhz"]))
    R = jax.nn.sigmoid(gcn(x, p["wxr"], p["bxr"]) + gcn(h, p["whr"], p["bhr"]))
    Ht = jnp.tanh(gcn(x, p["wxh"], p["bxh"]) + gcn(h * R, p["whh"], p["bhh"]))
    return Z * h + (1.0 - Z) * Ht


if __name__ == "__main__":
    N, F_IN, F_OUT = 64, 16, 32

    key = jax.random.PRNGKey(0)
    k_x, k_w, k_p, k_h = jax.random.split(key, 4)

    # Node features
    X = jax.random.normal(k_x, (N, F_IN), jnp.float32)

    # Ring graph, both directions (E = 2N edges), random positive weights
    idx = jnp.arange(N)
    src = jnp.concatenate([idx, (idx + 1) % N])
    dst = jnp.concatenate([(idx + 1) % N, idx])
    edge_index = jnp.stack([src, dst], axis=0)                       # [2, 2N]
    edge_weight = jax.random.uniform(k_w, (2 * N,), jnp.float32, minval=0.5, maxval=1.5)

    # Non-zero hidden state to exercise the full H/R path (module also allows H=None -> zeros).
    H = 0.5 * jax.random.normal(k_h, (N, F_OUT), jnp.float32)

    params = init_params(k_p, F_IN, F_OUT)
    A_hat = normalized_adjacency(edge_index, edge_weight, N)

    H_ref = gconv_gru_ref(A_hat, X, H, params)

    # 1) f32 resident-A path (exact module semantics up to fp reassociation).
    H_f32 = jax.block_until_ready(
        gconv_gru_pallas(A_hat, X, H, params, matmul_dtype=jnp.float32))
    assert H_f32.shape == (N, F_OUT)
    assert jnp.allclose(H_f32, H_ref, atol=1e-4, rtol=1e-4), "f32 resident mismatch"

    # 2) default bf16 A-stream (resident path); looser tolerance expected.
    H_bf16 = jax.block_until_ready(gconv_gru_pallas(A_hat, X, H, params))
    assert jnp.allclose(H_bf16, H_ref, atol=1e-1, rtol=1e-1), "bf16 resident mismatch"

    # 3) streamed (two-stage, K-tiled) path forced at small size, both dtypes.
    H_s32 = jax.block_until_ready(
        gconv_gru_pallas(A_hat, X, H, params, matmul_dtype=jnp.float32, path="streamed"))
    assert jnp.allclose(H_s32, H_ref, atol=1e-4, rtol=1e-4), "f32 streamed mismatch"
    H_sbf = jax.block_until_ready(gconv_gru_pallas(A_hat, X, H, params, path="streamed"))
    assert jnp.allclose(H_sbf, H_ref, atol=1e-1, rtol=1e-1), "bf16 streamed mismatch"

    # 4) recurrent use: step-invariant prep (A pad/cast, fused weights) hoisted once.
    prep = prepare_step_invariants(A_hat, params, matmul_dtype=jnp.float32)
    H_seq, H_seq_ref = H, H
    for _ in range(3):
        H_seq = gconv_gru_cell(X, H_seq, prep)
        H_seq_ref = gconv_gru_ref(A_hat, X, H_seq_ref, params)
    H_seq = jax.block_until_ready(H_seq)
    assert jnp.allclose(H_seq, H_seq_ref, atol=5e-4, rtol=5e-4), "recurrent mismatch"

    print("KERNEL_OK")
</pallas_src>

<mosaic_0001>
module attributes {stable_mosaic.version = 11 : i64} {
  func.func @_resident_kernel(%arg0: i32, %arg1: memref<128x128xf32, #tpu.memory_space<vmem>>, %arg2: memref<128x256xf32, #tpu.memory_space<vmem>>, %arg3: memref<128x128xf32, #tpu.memory_space<vmem>>, %arg4: memref<256x384xf32, #tpu.memory_space<vmem>>, %arg5: memref<128x128xf32, #tpu.memory_space<vmem>>, %arg6: memref<1x384xf32, #tpu.memory_space<vmem>>, %arg7: memref<1x128xf32, #tpu.memory_space<vmem>>, %arg8: memref<128x128xf32, #tpu.memory_space<vmem>>) attributes {dimension_semantics = [#tpu.dimension_semantics<arbitrary>], iteration_bounds = array<i64: 1>, scalar_prefetch = 0 : i64, scratch_operands = 0 : i64, tpu.core_type = #tpu.core_type<tc>, window_params = [{pipeline_mode = #tpu.pipeline_mode<synchronous>, transform_indices = @transform_0, window_bounds = array<i64: 128, 128>}, {pipeline_mode = #tpu.pipeline_mode<synchronous>, transform_indices = @transform_1, window_bounds = array<i64: 128, 256>}, {pipeline_mode = #tpu.pipeline_mode<synchronous>, transform_indices = @transform_2, window_bounds = array<i64: 128, 128>}, {pipeline_mode = #tpu.pipeline_mode<synchronous>, transform_indices = @transform_3, window_bounds = array<i64: 256, 384>}, {pipeline_mode = #tpu.pipeline_mode<synchronous>, transform_indices = @transform_4, window_bounds = array<i64: 128, 128>}, {pipeline_mode = #tpu.pipeline_mode<synchronous>, transform_indices = @transform_5, window_bounds = array<i64: 1, 384>}, {pipeline_mode = #tpu.pipeline_mode<synchronous>, transform_indices = @transform_6, window_bounds = array<i64: 1, 128>}, {pipeline_mode = #tpu.pipeline_mode<synchronous>, transform_indices = @transform_7, window_bounds = array<i64: 128, 128>}]} {
    %c0 = arith.constant 0 : index
    %c0_0 = arith.constant 0 : index
    %0 = vector.load %arg1[%c0, %c0_0] : memref<128x128xf32, #tpu.memory_space<vmem>>, vector<128x128xf32>
    %c0_1 = arith.constant 0 : index
    %c0_2 = arith.constant 0 : index
    %1 = vector.load %arg2[%c0_1, %c0_2] : memref<128x256xf32, #tpu.memory_space<vmem>>, vector<128x256xf32>
    %cst = arith.constant dense<0.000000e+00> : vector<128x256xf32>
    %2 = tpu.matmul %0, %1, %cst {dimension_numbers = #tpu.dot_dimension_numbers<[1], [0], [0], [1], [0, 0, 1, 1], [], []>} : vector<128x128xf32>, vector<128x256xf32>, vector<128x256xf32> -> vector<128x256xf32>
    %c0_3 = arith.constant 0 : index
    %c0_4 = arith.constant 0 : index
    %3 = vector.load %arg4[%c0_3, %c0_4] : memref<256x384xf32, #tpu.memory_space<vmem>>, vector<256x384xf32>
    %cst_5 = arith.constant dense<0.000000e+00> : vector<128x384xf32>
    %4 = tpu.matmul %2, %3, %cst_5 {dimension_numbers = #tpu.dot_dimension_numbers<[1], [0], [0], [1], [0, 0, 1, 1], [], []>} : vector<128x256xf32>, vector<256x384xf32>, vector<128x384xf32> -> vector<128x384xf32>
    %c0_6 = arith.constant 0 : index
    %c0_7 = arith.constant 0 : index
    %5 = vector.load %arg6[%c0_6, %c0_7] : memref<1x384xf32, #tpu.memory_space<vmem>>, vector<1x384xf32>
    %6 = vector.broadcast %5 : vector<1x384xf32> to vector<128x384xf32>
    %7 = arith.addf %4, %6 : vector<128x384xf32>
    %8 = vector.extract_strided_slice %7 {offsets = [0, 0], sizes = [128, 128], strides = [1, 1]} : vector<128x384xf32> to vector<128x128xf32>
    %9 = arith.negf %8 : vector<128x128xf32>
    %10 = math.exp %9 : vector<128x128xf32>
    %cst_8 = arith.constant 1.000000e+00 : f32
    %11 = vector.broadcast %cst_8 : f32 to vector<128x128xf32>
    %12 = arith.addf %11, %10 : vector<128x128xf32>
    %13 = arith.divf %11, %12 : vector<128x128xf32>
    %14 = vector.extract_strided_slice %7 {offsets = [0, 128], sizes = [128, 128], strides = [1, 1]} : vector<128x384xf32> to vector<128x128xf32>
    %15 = arith.negf %14 : vector<128x128xf32>
    %16 = math.exp %15 : vector<128x128xf32>
    %cst_9 = arith.constant 1.000000e+00 : f32
    %17 = vector.broadcast %cst_9 : f32 to vector<128x128xf32>
    %18 = arith.addf %17, %16 : vector<128x128xf32>
    %19 = arith.divf %17, %18 : vector<128x128xf32>
    %20 = vector.extract_strided_slice %7 {offsets = [0, 256], sizes = [128, 128], strides = [1, 1]} : vector<128x384xf32> to vector<128x128xf32>
    %c0_10 = arith.constant 0 : index
    %c0_11 = arith.constant 0 : index
    %21 = vector.load %arg3[%c0_10, %c0_11] : memref<128x128xf32, #tpu.memory_space<vmem>>, vector<128x128xf32>
    %22 = arith.mulf %21, %19 : vector<128x128xf32>
    %cst_12 = arith.constant dense<0.000000e+00> : vector<128x128xf32>
    %23 = tpu.matmul %0, %22, %cst_12 {dimension_numbers = #tpu.dot_dimension_numbers<[1], [0], [0], [1], [0, 0, 1, 1], [], []>} : vector<128x128xf32>, vector<128x128xf32>, vector<128x128xf32> -> vector<128x128xf32>
    %c0_13 = arith.constant 0 : index
    %c0_14 = arith.constant 0 : index
    %24 = vector.load %arg5[%c0_13, %c0_14] : memref<128x128xf32, #tpu.memory_space<vmem>>, vector<128x128xf32>
    %cst_15 = arith.constant dense<0.000000e+00> : vector<128x128xf32>
    %25 = tpu.matmul %23, %24, %cst_15 {dimension_numbers = #tpu.dot_dimension_numbers<[1], [0], [0], [1], [0, 0, 1, 1], [], []>} : vector<128x128xf32>, vector<128x128xf32>, vector<128x128xf32> -> vector<128x128xf32>
    %26 = arith.addf %20, %25 : vector<128x128xf32>
    %c0_16 = arith.constant 0 : index
    %c0_17 = arith.constant 0 : index
    %27 = vector.load %arg7[%c0_16, %c0_17] : memref<1x128xf32, #tpu.memory_space<vmem>>, vector<1x128xf32>
    %28 = vector.broadcast %27 : vector<1x128xf32> to vector<128x128xf32>
    %29 = arith.addf %26, %28 : vector<128x128xf32>
    %30 = math.tanh %29 : vector<128x128xf32>
    %cst_18 = arith.constant 1.000000e+00 : f32
    %31 = vector.broadcast %cst_18 : f32 to vector<128x128xf32>
    %32 = arith.subf %31, %13 : vector<128x128xf32>
    %33 = arith.subf %30, %21 : vector<128x128xf32>
    %34 = arith.mulf %32, %33 : vector<128x128xf32>
    %35 = arith.addf %21, %34 : vector<128x128xf32>
    %c0_19 = arith.constant 0 : index
    %c0_20 = arith.constant 0 : index
    %36 = vector.load %arg8[%c0_19, %c0_20] : memref<128x128xf32, #tpu.memory_space<vmem>>, vector<128x128xf32>
    tpu.vector_store %arg8[%c0_19, %c0_20], %35 {strides = array<i32>} : memref<128x128xf32, #tpu.memory_space<vmem>>, vector<128x128xf32>,
    return
  }
  func.func @transform_0(%arg0: i32) -> (i32, i32) {
    %c0_i32 = arith.constant 0 : i32
    %c0_i32_0 = arith.constant 0 : i32
    %c0_i32_1 = arith.constant 0 : i32
    return %c0_i32, %c0_i32_0 : i32, i32
  }
  func.func @transform_1(%arg0: i32) -> (i32, i32) {
    %c0_i32 = arith.constant 0 : i32
    %c0_i32_0 = arith.constant 0 : i32
    %c0_i32_1 = arith.constant 0 : i32
    return %c0_i32, %c0_i32_0 : i32, i32
  }
  func.func @transform_2(%arg0: i32) -> (i32, i32) {
    %c0_i32 = arith.constant 0 : i32
    %c0_i32_0 = arith.constant 0 : i32
    %c0_i32_1 = arith.constant 0 : i32
    return %c0_i32, %c0_i32_0 : i32, i32
  }
  func.func @transform_3(%arg0: i32) -> (i32, i32) {
    %c0_i32 = arith.constant 0 : i32
    %c0_i32_0 = arith.constant 0 : i32
    %c0_i32_1 = arith.constant 0 : i32
    return %c0_i32, %c0_i32_0 : i32, i32
  }
  func.func @transform_4(%arg0: i32) -> (i32, i32) {
    %c0_i32 = arith.constant 0 : i32
    %c0_i32_0 = arith.constant 0 : i32
    %c0_i32_1 = arith.constant 0 : i32
    return %c0_i32, %c0_i32_0 : i32, i32
  }
  func.func @transform_5(%arg0: i32) -> (i32, i32) {
    %c0_i32 = arith.constant 0 : i32
    %c0_i32_0 = arith.constant 0 : i32
    %c0_i32_1 = arith.constant 0 : i32
    return %c0_i32, %c0_i32_0 : i32, i32
  }
  func.func @transform_6(%arg0: i32) -> (i32, i32) {
    %c0_i32 = arith.constant 0 : i32
    %c0_i32_0 = arith.constant 0 : i32
    %c0_i32_1 = arith.constant 0 : i32
    return %c0_i32, %c0_i32_0 : i32, i32
  }
  func.func @transform_7(%arg0: i32) -> (i32, i32) {
    %c0_i32 = arith.constant 0 : i32
    %c0_i32_0 = arith.constant 0 : i32
    %c0_i32_1 = arith.constant 0 : i32
    return %c0_i32, %c0_i32_0 : i32, i32
  }
}

</mosaic_0001>

<bundles_post_ra>
// kernel: tpu_custom_call.1
= control target key start
LH: loop header
LB: loop body
LE: loop exit
PB: predicated region body
PF: predicated region fallthrough
CT: control target
= control target key end

     0   :  { %12 = vsyncpa [#allocation3], 0  ;;  %s2613_s0 = inlined_call_operand.hbm [shape: f32[128,128], index: 0, kind: input, shape index: {}]   ;;  %s2614_s1 = inlined_call_operand.hbm [shape: f32[128,256], index: 1, kind: input, shape index: {}]   ;;  %s2615_s2 = inlined_call_operand.hbm [shape: f32[128,128], index: 2, kind: input, shape index: {}]   ;;  %s2616_s3 = inlined_call_operand.hbm [shape: f32[256,384], index: 3, kind: input, shape index: {}]   ;;  %s2617_s4 = inlined_call_operand.hbm [shape: f32[128,128], index: 4, kind: input, shape index: {}]   ;;  %s2618_s5 = inlined_call_operand.vmem [shape: f32[1,384], index: 5, kind: input, shape index: {}]   ;;  %s2619_s6 = inlined_call_operand.vmem [shape: f32[1,128], index: 6, kind: input, shape index: {}]   ;;  %s2620_s7 = inlined_call_operand.hbm [shape: f32[128,128], index: 7, kind: output, shape index: {}]  }
   0x1   :  { %13 = vsyncpa [#allocation6], 0 }
   0x2   :  { %14 = vsyncpa [#allocation9], 0 }
   0x3   :  { %15 = vsyncpa [#allocation4], 0  ;;  %s2035_s24 = smov [#allocation5]  }
   0x4   :  { %s33_s25 = sshll.u32 %s2035_s24, 4  ;;  %s34_s25 = int_to_ptr.vmem [resolvable:$true] %s33_s25 }
   0x5   :  { %s1915_s26 = scalar_lea.vmem %s34_s25, 4096  ;;  %p1920_p1 = scmp.lt.s32.totalorder %s34_s25, %s34_s25 }
   0x6   :  { %p1916_p0 = scmp.ne.s32.totalorder %s34_s25, %s1915_s26  ;;  %p1921_p2 = scmp.lt.s32.totalorder %s1915_s26, %s1915_s26 }
   0x8   :  { %p1922_p3 = por %p1921_p2, %p1920_p1 }
   0xa   :  { %p1923_p4 = pnand %p1922_p3, %p1916_p0 }
   0xc   :  { %1926 = shalt.err (!%p1923_p4)
}
   0xd   :  { %s2036_s27 = smov 256   ;;  %s2037_s28 = smov 16  }
   0xe   :  { %39 = dma.hbm_to_vmem [thread:$0]  %s2614_s1, 4096, %s34_s25, [#allocation6], %s2036_s27, %s2036_s27, %s2037_s28  }
   0xf   :  { %s2038_s8 = smov [#allocation8]  }
  0x10   :  { %s57_s9 = sshll.u32 %s2038_s8, 4  ;;  %s58_s9 = int_to_ptr.vmem [resolvable:$true] %s57_s9 }
  0x11   :  { %s1935_s10 = scalar_lea.vmem %s58_s9, 12288  ;;  %p1940_p6 = scmp.lt.s32.totalorder %s58_s9, %s58_s9 }
  0x12   :  { %p1936_p5 = scmp.ne.s32.totalorder %s58_s9, %s1935_s10  ;;  %p1941_p7 = scmp.lt.s32.totalorder %s1935_s10, %s1935_s10 }
  0x14   :  { %p1942_p8 = por %p1941_p7, %p1940_p6 }
  0x16   :  { %p1943_p9 = pnand %p1942_p8, %p1936_p5 }
  0x18   :  { %1946 = shalt.err (!%p1943_p9)
}
  0x19   :  { %s2039_s11 = smov 384   ;;  %s2040_s12 = smov 24  }
  0x1a   :  { %63 = dma.hbm_to_vmem [thread:$0]  %s2616_s3, 12288, %s58_s9, [#allocation9], %s2039_s11, %s2039_s11, %s2040_s12  }
  0x1b   :  { %s2041_s15 = smov [#allocation2]  }
  0x1c   :  { %s21_s16 = sshll.u32 %s2041_s15, 4  ;;  %s22_s16 = int_to_ptr.vmem [resolvable:$true] %s21_s16 }
  0x1d   :  { %s1955_s1 = scalar_lea.vmem %s22_s16, 2048  ;;  %p1960_p11 = scmp.lt.s32.totalorder %s22_s16, %s22_s16 }
  0x1e   :  { %p1956_p10 = scmp.ne.s32.totalorder %s22_s16, %s1955_s1  ;;  %p1961_p12 = scmp.lt.s32.totalorder %s1955_s1, %s1955_s1 }
  0x20   :  { %p1962_p13 = por %p1961_p12, %p1960_p11 }
  0x22   :  { %p1963_p0 = pnand %p1962_p13, %p1956_p10 }
  0x24   :  { %1966 = shalt.err (!%p1963_p0)
}
  0x25   :  { %s2042_s17 = smov 128   ;;  %s2043_s18 = smov 8  }
  0x26   :  { %27 = dma.hbm_to_vmem [thread:$0]  %s2613_s0, 2048, %s22_s16, [#allocation3], %s2042_s17, %s2042_s17, %s2043_s18  }
  0x27   :  { %s2044_s3 = smov [#allocation7]   ;;  %s2045_s22 = smov [#allocation10]  }
  0x28   :  { %s45_s21 = sshll.u32 %s2044_s3, 4  ;;  %s69_s23 = sshll.u32 %s2045_s22, 4  ;;  %s46_s21 = int_to_ptr.vmem [resolvable:$true] %s45_s21  ;;  %s70_s23 = int_to_ptr.vmem [resolvable:$true] %s69_s23 }
  0x29   :  { %s1975_s24 = scalar_lea.vmem %s46_s21, 2048  ;;  %p1980_p2 = scmp.lt.s32.totalorder %s46_s21, %s46_s21 }
  0x2a   :  { %p1976_p1 = scmp.ne.s32.totalorder %s46_s21, %s1975_s24  ;;  %p1981_p3 = scmp.lt.s32.totalorder %s1975_s24, %s1975_s24 }
  0x2c   :  { %p1982_p4 = por %p1981_p3, %p1980_p2 }
  0x2e   :  { %p1983_p5 = pnand %p1982_p4, %p1976_p1 }
  0x30   :  { %1986 = shalt.err (!%p1983_p5)
}
  0x31   :  { %51 = dma.hbm_to_vmem [thread:$0]  %s2615_s2, 2048, %s46_s21, [#allocation6], %s2042_s17, %s2042_s17, %s2043_s18  }
  0x32   :  { %s1995_s0 = scalar_lea.vmem %s70_s23, 2048  ;;  %p2000_p7 = scmp.lt.s32.totalorder %s70_s23, %s70_s23 }
  0x33   :  { %p1996_p6 = scmp.ne.s32.totalorder %s70_s23, %s1995_s0  ;;  %p2001_p8 = scmp.lt.s32.totalorder %s1995_s0, %s1995_s0 }
  0x35   :  { %p2002_p9 = por %p2001_p8, %p2000_p7 }
  0x37   :  { %p2003_p10 = pnand %p2002_p9, %p1996_p6 }
  0x39   :  { %2006 = shalt.err (!%p2003_p10)
}
  0x3a   :  { %75 = dma.hbm_to_vmem [thread:$0]  %s2617_s4, 2048, %s70_s23, [#allocation9], %s2042_s17, %s2042_s17, %s2043_s18  }
  0x3b   :  { %2027 = dma.done.wait [#allocation3], 2048  }
  0x3c   :  { %2028 = vsyncadd [#allocation3], 4294965248 }
  0x3d   :  { %2029 = dma.done.wait [#allocation6], 6144  }
  0x3e   :  { %2030 = vsyncadd [#allocation6], 4294961152 }
  0x3f   :  { %2031 = dma.done.wait [#allocation9], 14336  }
  0x40   :  { %2032 = vsyncadd [#allocation9], 4294952960  ;;  %v2046_v0 = vmov 0.0   ;;  %v142_v1 = vld [vmem:[#allocation5 + $0xf8] sm:$0xff]  ;;  %v141_v2 = vld [vmem:[#allocation5 + $0xf0] sm:$0xff] }
  0x41   :  { %207 = vmatprep.mubr.f32.mxu0 %v2046_v0  ;;  %v140_v3 = vld [vmem:[#allocation5 + $0xe8] sm:$0xff]  ;;  %143 = vmatprep.subr.mxu0 %v142_v1  ;;  %v139_v4 = vld [vmem:[#allocation5 + $0xe0] sm:$0xff]  ;;  %v138_v5 = vld [vmem:[#allocation5 + $0xd8] sm:$0xff] }
  0x42   :  { %144 = vmatpush1.msra.mxu0 %v141_v2  ;;  %v137_v6 = vld [vmem:[#allocation5 + $0xd0] sm:$0xff]  ;;  %v136_v7 = vld [vmem:[#allocation5 + $0xc8] sm:$0xff]  ;;  %v135_v8 = vld [vmem:[#allocation5 + $0xc0] sm:$0xff] }
  0x43   :  { %145 = vmatprep.subr.mxu0 %v140_v3  ;;  %v134_v9 = vld [vmem:[#allocation5 + $0xb8] sm:$0xff]  ;;  %v133_v10 = vld [vmem:[#allocation5 + $0xb0] sm:$0xff]  ;;  %v132_v11 = vld [vmem:[#allocation5 + $0xa8] sm:$0xff] }
  0x44   :  { %146 = vmatpush1.msra.mxu0 %v139_v4  ;;  %v131_v12 = vld [vmem:[#allocation5 + $0xa0] sm:$0xff]  ;;  %v130_v13 = vld [vmem:[#allocation5 + $0x98] sm:$0xff]  ;;  %v129_v14 = vld [vmem:[#allocation5 + $0x90] sm:$0xff] }
  0x45   :  { %147 = vmatprep.subr.mxu0 %v138_v5  ;;  %v128_v15 = vld [vmem:[#allocation5 + $0x88] sm:$0xff]  ;;  %v127_v16 = vld [vmem:[#allocation5 + $0x80] sm:$0xff]  ;;  %v126_v17 = vld [vmem:[#allocation5 + $0x78] sm:$0xff] }
  0x46   :  { %148 = vmatpush1.msra.mxu0 %v137_v6  ;;  %v125_v18 = vld [vmem:[#allocation5 + $0x70] sm:$0xff]  ;;  %v124_v19 = vld [vmem:[#allocation5 + $0x68] sm:$0xff]  ;;  %v347_v22 = vld [vmem:[#allocation8 + $0x158] sm:$0xff] }
  0x47   :  { %149 = vmatprep.subr.mxu0 %v136_v7  ;;  %v350_v20 = vld [vmem:[#allocation8 + $0x170] sm:$0xff]  ;;  %v349_v21 = vld [vmem:[#allocation8 + $0x168] sm:$0xff]  ;;  %v123_v23 = vld [vmem:[#allocation5 + $0x60] sm:$0xff] }
  0x48   :  { %150 = vmatpush1.msra.mxu0 %v135_v8  ;;  %417 = vmatprep.subr.mxu1 %v350_v20  ;;  %v346_v24 = vld [vmem:[#allocation8 + $0x150] sm:$0xff]  ;;  %v122_v25 = vld [vmem:[#allocation5 + $0x58] sm:$0xff]  ;;  %v344_v26 = vld [vmem:[#allocation8 + $0x140] sm:$0xff] }
  0x49   :  { %151 = vmatprep.subr.mxu0 %v134_v9  ;;  %418 = vmatpush1.msra.mxu1 %v349_v21  ;;  %v121_v27 = vld [vmem:[#allocation5 + $0x50] sm:$0xff]  ;;  %v343_v28 = vld [vmem:[#allocation8 + $0x138] sm:$0xff]  ;;  %v120_v29 = vld [vmem:[#allocation5 + $0x48] sm:$0xff] }
  0x4a   :  { %152 = vmatpush1.msra.mxu0 %v133_v10  ;;  %419 = vmatprep.subr.mxu1 %v347_v22  ;;  %v341_v30 = vld [vmem:[#allocation8 + $0x128] sm:$0xff]  ;;  %v119_v31 = vld [vmem:[#allocation5 + $0x40] sm:$0xff]  ;;  %v118_v33 = vld [vmem:[#allocation5 + $0x38] sm:$0xff] }
  0x4b   :  { %153 = vmatprep.subr.mxu0 %v132_v11  ;;  %420 = vmatpush1.msra.mxu1 %v346_v24  ;;  %v340_v32 = vld [vmem:[#allocation8 + $0x120] sm:$0xff]  ;;  %v338_v34 = vld [vmem:[#allocation8 + $0x110] sm:$0xff]  ;;  %v337_v36 = vld [vmem:[#allocation8 + $0x108] sm:$0xff] }
  0x4c   :  { %154 = vmatpush1.msra.mxu0 %v131_v12  ;;  %421 = vmatprep.subr.mxu1 %v344_v26  ;;  %v117_v35 = vld [vmem:[#allocation5 + $0x30] sm:$0xff]  ;;  %v116_v37 = vld [vmem:[#allocation5 + $0x28] sm:$0xff]  ;;  %v335_v38 = vld [vmem:[#allocation8 + $0xf8] sm:$0xff] }
  0x4d   :  { %155 = vmatprep.subr.mxu0 %v130_v13  ;;  %422 = vmatpush1.msra.mxu1 %v343_v28  ;;  %v115_v39 = vld [vmem:[#allocation5 + $0x20] sm:$0xff]  ;;  %v334_v40 = vld [vmem:[#allocation8 + $0xf0] sm:$0xff]  ;;  %v114_v41 = vld [vmem:[#allocation5 + $0x18] sm:$0xff] }
  0x4e   :  { %156 = vmatpush1.msra.mxu0 %v129_v14  ;;  %423 = vmatprep.subr.mxu1 %v341_v30  ;;  %v332_v42 = vld [vmem:[#allocation8 + $0xe0] sm:$0xff]  ;;  %v113_v43 = vld [vmem:[#allocation5 + $0x10] sm:$0xff]  ;;  %v331_v44 = vld [vmem:[#allocation8 + $0xd8] sm:$0xff] }
  0x4f   :  { %157 = vmatprep.subr.mxu0 %v128_v15  ;;  %424 = vmatpush1.msra.mxu1 %v340_v32  ;;  %v112_v45 = vld [vmem:[#allocation5 + $0x8] sm:$0xff]  ;;  %v111_v47 = vld [vmem:[#allocation5] sm:$0xff]  ;;  %v326_v50 = vld [vmem:[#allocation8 + $0xb0] sm:$0xff] }
  0x50   :  { %158 = vmatpush1.msra.mxu0 %v127_v16  ;;  %425 = vmatprep.subr.mxu1 %v338_v34  ;;  %v329_v46 = vld [vmem:[#allocation8 + $0xc8] sm:$0xff]  ;;  %v328_v48 = vld [vmem:[#allocation8 + $0xc0] sm:$0xff]  ;;  %v323_v52 = vld [vmem:[#allocation8 + $0x98] sm:$0xff] }
  0x51   :  { %159 = vmatprep.subr.mxu0 %v126_v17  ;;  %426 = vmatpush1.msra.mxu1 %v337_v36  ;;  %v2113_v49 = vld [vmem:[#allocation2] sm:$0xff]  ;;  %v325_v51 = vld [vmem:[#allocation8 + $0xa8] sm:$0xff]  ;;  %v399_v53 = vld [vmem:[#allocation8 + $0x2f8] sm:$0xff] }
  0x52   :  { %160 = vmatpush1.msra.mxu0 %v125_v18  ;;  %427 = vmatprep.subr.mxu1 %v335_v38  ;;  %v322_v54 = vld [vmem:[#allocation8 + $0x90] sm:$0xff]  ;;  %v351_v55 = vld [vmem:[#allocation8 + $0x178] sm:$0xff]  ;;  %v96_v56 = vld [vmem:[#allocation2 + $0x8] sm:$0xff] }
  0x53   :  { %161 = vmatprep.subr.mxu0 %v124_v19  ;;  %428 = vmatpush1.msra.mxu1 %v334_v40  ;;  %v320_v57 = vld [vmem:[#allocation8 + $0x80] sm:$0xff]  ;;  %v319_v58 = vld [vmem:[#allocation8 + $0x78] sm:$0xff]  ;;  %v317_v59 = vld [vmem:[#allocation8 + $0x68] sm:$0xff] }
  0x54   :  { %162 = vmatpush1.msra.mxu0 %v123_v23  ;;  %429 = vmatprep.subr.mxu1 %v332_v42  ;;  %v396_v60 = vld [vmem:[#allocation8 + $0x2e0] sm:$0xff]  ;;  %v97_v63 = vld [vmem:[#allocation2 + $0x10] sm:$0xff]  ;;  %v313_v2 = vld [vmem:[#allocation8 + $0x48] sm:$0xff] }
  0x55   :  { %163 = vmatprep.subr.mxu0 %v122_v25  ;;  %430 = vmatpush1.msra.mxu1 %v331_v44  ;;  %v316_v61 = vld [vmem:[#allocation8 + $0x60] sm:$0xff]  ;;  %v314_v1 = vld [vmem:[#allocation8 + $0x50] sm:$0xff]  ;;  %v311_v3 = vld [vmem:[#allocation8 + $0x38] sm:$0xff] }
  0x56   :  { %164 = vmatpush1.msra.mxu0 %v121_v27  ;;  %431 = vmatprep.subr.mxu1 %v329_v46  ;;  %v348_v62 = vld [vmem:[#allocation8 + $0x160] sm:$0xff]  ;;  %v393_v4 = vld [vmem:[#allocation8 + $0x2c8] sm:$0xff]  ;;  %v310_v5 = vld [vmem:[#allocation8 + $0x30] sm:$0xff] }
  0x57   :  { %165 = vmatprep.subr.mxu0 %v120_v29  ;;  %432 = vmatpush1.msra.mxu1 %v328_v48  ;;  %v345_v6 = vld [vmem:[#allocation8 + $0x148] sm:$0xff]  ;;  %v98_v7 = vld [vmem:[#allocation2 + $0x18] sm:$0xff]  ;;  %v308_v8 = vld [vmem:[#allocation8 + $0x20] sm:$0xff] }
  0x58   :  { %166 = vmatpush1.msra.mxu0 %v119_v31  ;;  %433 = vmatprep.subr.mxu1 %v326_v50  ;;  %v307_v9 = vld [vmem:[#allocation8 + $0x18] sm:$0xff]  ;;  %v305_v10 = vld [vmem:[#allocation8 + $0x8] sm:$0xff]  ;;  %v390_v11 = vld [vmem:[#allocation8 + $0x2b0] sm:$0xff] }
  0x59   :  { %167 = vmatprep.subr.mxu0 %v118_v33  ;;  %434 = vmatpush1.msra.mxu1 %v325_v51  ;;  %v304_v12 = vld [vmem:[#allocation8] sm:$0xff]  ;;  %v342_v13 = vld [vmem:[#allocation8 + $0x130] sm:$0xff]  ;;  %v397_v16 = vld [vmem:[#allocation8 + $0x2e8] sm:$0xff] }
  0x5a   :  { %168 = vmatpush1.msra.mxu0 %v117_v35  ;;  %435 = vmatprep.subr.mxu1 %v323_v52  ;;  %v99_v14 = vld [vmem:[#allocation2 + $0x20] sm:$0xff]  ;;  %v398_v15 = vld [vmem:[#allocation8 + $0x2f0] sm:$0xff]  ;;  %v395_v17 = vld [vmem:[#allocation8 + $0x2d8] sm:$0xff] }
  0x5b   :  { %169 = vmatprep.subr.mxu0 %v116_v37  ;;  %436 = vmatpush1.msra.mxu1 %v322_v54  ;;  %v387_v18 = vld [vmem:[#allocation8 + $0x298] sm:$0xff]  ;;  %v394_v19 = vld [vmem:[#allocation8 + $0x2d0] sm:$0xff]  ;;  %v2121_v21 = vld [vmem:[#allocation2 + $0x28] sm:$0xff] }
  0x5c   :  { %170 = vmatpush1.msra.mxu0 %v115_v39  ;;  %437 = vmatprep.subr.mxu1 %v320_v57  ;;  %v339_v20 = vld [vmem:[#allocation8 + $0x118] sm:$0xff]  ;;  %v392_v22 = vld [vmem:[#allocation8 + $0x2c0] sm:$0xff]  ;;  %v389_v24 = vld [vmem:[#allocation8 + $0x2a8] sm:$0xff] }
  0x5d   :  { %171 = vmatprep.subr.mxu0 %v114_v41  ;;  %438 = vmatpush1.msra.mxu1 %v319_v58  ;;  %v391_v23 = vld [vmem:[#allocation8 + $0x2b8] sm:$0xff]  ;;  %v384_v25 = vld [vmem:[#allocation8 + $0x280] sm:$0xff]  ;;  %v2125_v28 = vld [vmem:[#allocation2 + $0x30] sm:$0xff] }
  0x5e   :  { %172 = vmatpush1.msra.mxu0 %v113_v43  ;;  %439 = vmatprep.subr.mxu1 %v317_v59  ;;  %v388_v26 = vld [vmem:[#allocation8 + $0x2a0] sm:$0xff]  ;;  %v386_v29 = vld [vmem:[#allocation8 + $0x290] sm:$0xff]  ;;  %v385_v30 = vld [vmem:[#allocation8 + $0x288] sm:$0xff] }
  0x5f   :  { %173 = vmatprep.subr.mxu0 %v112_v45  ;;  %440 = vmatpush1.msra.mxu1 %v316_v61  ;;  %v336_v27 = vld [vmem:[#allocation8 + $0x100] sm:$0xff]  ;;  %v383_v31 = vld [vmem:[#allocation8 + $0x278] sm:$0xff]  ;;  %v381_v32 = vld [vmem:[#allocation8 + $0x268] sm:$0xff] }
  0x60   :  { %174 = vmatpush1.msra.mxu0 %v111_v47  ;;  %441 = vmatprep.subr.mxu1 %v314_v1  ;;  %v382_v33 = vld [vmem:[#allocation8 + $0x270] sm:$0xff]  ;;  %v333_v34 = vld [vmem:[#allocation8 + $0xe8] sm:$0xff]  ;;  %v2129_v35 = vld [vmem:[#allocation2 + $0x38] sm:$0xff] }
  0x61   :  { %208 = vmatmul.mubr.f32.vlgmr.msra.gmra.mxu0 %v2113_v49  ;;  %1440 = vmatprep.subr.mxu0 %v399_v53  ;;  %v380_v36 = vld [vmem:[#allocation8 + $0x260] sm:$0xff]  ;;  %v379_v37 = vld [vmem:[#allocation8 + $0x258] sm:$0xff]  ;;  %v377_v38 = vld [vmem:[#allocation8 + $0x248] sm:$0xff] }
  0x62   :  { %213 = vmatprep.mubr.f32.mxu0 %v2046_v0  ;;  %1441 = vmatpush3.msra.mxu0 %v351_v55  ;;  %v378_v39 = vld [vmem:[#allocation8 + $0x250] sm:$0xff]  ;;  %v376_v40 = vld [vmem:[#allocation8 + $0x240] sm:$0xff]  ;;  %v375_v44 = vld [vmem:[#allocation8 + $0x238] sm:$0xff] }
  0x63   :  { %1442 = vmatprep.subr.mxu0 %v396_v60  ;;  %442 = vmatpush1.msra.mxu1 %v313_v2  ;;  %v330_v41 = vld [vmem:[#allocation8 + $0xd0] sm:$0xff]  ;;  %v2133_v42 = vld [vmem:[#allocation2 + $0x40] sm:$0xff]  ;;  %v373_v45 = vld [vmem:[#allocation8 + $0x228] sm:$0xff] }
  0x64   :  { %1443 = vmatpush3.msra.mxu0 %v348_v62  ;;  %443 = vmatprep.subr.mxu1 %v311_v3  ;;  %v374_v43 = vld [vmem:[#allocation8 + $0x230] sm:$0xff]  ;;  %v327_v46 = vld [vmem:[#allocation8 + $0xb8] sm:$0xff]  ;;  %v372_v48 = vld [vmem:[#allocation8 + $0x220] sm:$0xff] }
  0x65   :  { %214 = vmatmul.mubr.f32.gmra.mxu0 %v96_v56  ;;  %1444 = vmatprep.subr.mxu0 %v393_v4  ;;  %v371_v47 = vld [vmem:[#allocation8 + $0x218] sm:$0xff]  ;;  %v2137_v50 = vld [vmem:[#allocation2 + $0x48] sm:$0xff]  ;;  %v370_v51 = vld [vmem:[#allocation8 + $0x210] sm:$0xff] }
  0x66   :  { %219 = vmatprep.mubr.f32.mxu0 %v2046_v0  ;;  %444 = vmatpush1.msra.mxu1 %v310_v5  ;;  %v324_v52 = vld [vmem:[#allocation8 + $0xa0] sm:$0xff]  ;;  %v369_v54 = vld [vmem:[#allocation8 + $0x208] sm:$0xff]  ;;  %v367_v55 = vld [vmem:[#allocation8 + $0x1f8] sm:$0xff] }
  0x67   :  { %1445 = vmatpush3.msra.mxu0 %v345_v6  ;;  %445 = vmatprep.subr.mxu1 %v308_v8  ;;  %v368_v53 = vld [vmem:[#allocation8 + $0x200] sm:$0xff]  ;;  %v321_v56 = vld [vmem:[#allocation8 + $0x88] sm:$0xff]  ;;  %v2141_v57 = vld [vmem:[#allocation2 + $0x50] sm:$0xff] }
  0x68   :  { %446 = vmatpush1.msra.mxu1 %v307_v9  ;;  %1446 = vmatprep.subr.mxu0 %v390_v11  ;;  %v365_v58 = vld [vmem:[#allocation8 + $0x1e8] sm:$0xff]  ;;  %v366_v59 = vld [vmem:[#allocation8 + $0x1f0] sm:$0xff]  ;;  %v364_v60 = vld [vmem:[#allocation8 + $0x1e0] sm:$0xff] }
  0x69   :  { %220 = vmatmul.mubr.f32.gmra.mxu0 %v97_v63  ;;  %447 = vmatprep.subr.mxu1 %v305_v10  ;;  %v318_v61 = vld [vmem:[#allocation8 + $0x70] sm:$0xff]  ;;  %v363_v63 = vld [vmem:[#allocation8 + $0x1d8] sm:$0xff]  ;;  %v361_v2 = vld [vmem:[#allocation8 + $0x1c8] sm:$0xff] }
  0x6a   :  { %225 = vmatprep.mubr.f32.mxu0 %v2046_v0  ;;  %448 = vmatpush1.msra.mxu1 %v304_v12  ;;  %v362_v62 = vld [vmem:[#allocation8 + $0x1d0] sm:$0xff]  ;;  %v2145_v1 = vld [vmem:[#allocation2 + $0x58] sm:$0xff]  ;;  %v360_v5 = vld [vmem:[#allocation8 + $0x1c0] sm:$0xff] }
  0x6b   :  { %1447 = vmatpush3.msra.mxu0 %v342_v13  ;;  %449 = vmatprep.subr.mxu1 %v398_v15  ;;  %v315_v3 = vld [vmem:[#allocation8 + $0x58] sm:$0xff]  ;;  %v358_v6 = vld [vmem:[#allocation8 + $0x1b0] sm:$0xff]  ;;  %v2149_v8 = vld [vmem:[#allocation2 + $0x60] sm:$0xff] }
  0x6c   :  { %450 = vmatpush2.msra.mxu1 %v397_v16  ;;  %1448 = vmatprep.subr.mxu0 %v387_v18  ;;  %v359_v4 = vld [vmem:[#allocation8 + $0x1b8] sm:$0xff]  ;;  %v2153_v9 = vld [vmem:[#allocation2 + $0x68] sm:$0xff]  ;;  %v2157_v10 = vld [vmem:[#allocation2 + $0x70] sm:$0xff] }
  0x6d   :  { %226 = vmatmul.mubr.f32.gmra.mxu0 %v98_v7  ;;  %451 = vmatprep.subr.mxu1 %v395_v17  ;;  %v312_v7 = vld [vmem:[#allocation8 + $0x40] sm:$0xff]  ;;  %v2161_v11 = vld [vmem:[#allocation2 + $0x78] sm:$0xff]  ;;  %v357_v13 = vld [vmem:[#allocation8 + $0x1a8] sm:$0xff] }
  0x6e   :  { %231 = vmatprep.mubr.f32.mxu0 %v2046_v0  ;;  %452 = vmatpush2.msra.mxu1 %v394_v19  ;;  %v356_v12 = vld [vmem:[#allocation8 + $0x1a0] sm:$0xff]  ;;  %v309_v15 = vld [vmem:[#allocation8 + $0x28] sm:$0xff]  ;;  %v354_v17 = vld [vmem:[#allocation8 + $0x190] sm:$0xff] }
  0x6f   :  { %1449 = vmatpush3.msra.mxu0 %v339_v20  ;;  %453 = vmatprep.subr.mxu1 %v392_v22  ;;  %v353_v16 = vld [vmem:[#allocation8 + $0x188] sm:$0xff]  ;;  %v352_v18 = vld [vmem:[#allocation8 + $0x180] sm:$0xff]  ;;  %v306_v19 = vld [vmem:[#allocation8 + $0x10] sm:$0xff] }
  0x70   :  { %454 = vmatpush2.msra.mxu1 %v391_v23  ;;  %1450 = vmatprep.subr.mxu0 %v384_v25 }
  0x71   :  { %232 = vmatmul.mubr.f32.gmra.mxu0 %v99_v14  ;;  %455 = vmatprep.subr.mxu1 %v389_v24  ;;  %v355_v14 = vld [vmem:[#allocation8 + $0x198] sm:$0xff] }
  0x72   :  { %237 = vmatprep.mubr.f32.mxu0 %v2046_v0  ;;  %456 = vmatpush2.msra.mxu1 %v388_v26 }
  0x73   :  { %1451 = vmatpush3.msra.mxu0 %v336_v27  ;;  %457 = vmatprep.subr.mxu1 %v386_v29 }
  0x74   :  { %458 = vmatpush2.msra.mxu1 %v385_v30  ;;  %1452 = vmatprep.subr.mxu0 %v381_v32 }
  0x75   :  { %238 = vmatmul.mubr.f32.gmra.mxu0 %v2121_v21  ;;  %459 = vmatprep.subr.mxu1 %v383_v31 }
  0x76   :  { %243 = vmatprep.mubr.f32.mxu0 %v2046_v0  ;;  %460 = vmatpush2.msra.mxu1 %v382_v33 }
  0x77   :  { %1453 = vmatpush3.msra.mxu0 %v333_v34  ;;  %461 = vmatprep.subr.mxu1 %v380_v36 }
  0x78   :  { %462 = vmatpush2.msra.mxu1 %v379_v37  ;;  %1454 = vmatprep.subr.mxu0 %v378_v39 }
  0x79   :  { %244 = vmatmul.mubr.f32.gmra.mxu0 %v2125_v28  ;;  %463 = vmatprep.subr.mxu1 %v377_v38 }
  0x7a   :  { %249 = vmatprep.mubr.f32.mxu0 %v2046_v0  ;;  %464 = vmatpush2.msra.mxu1 %v376_v40 }
  0x7b   :  { %1455 = vmatpush3.msra.mxu0 %v330_v41  ;;  %465 = vmatprep.subr.mxu1 %v374_v43 }
  0x7c   :  { %1456 = vmatprep.subr.mxu0 %v375_v44  ;;  %466 = vmatpush2.msra.mxu1 %v373_v45 }
  0x7d   :  { %250 = vmatmul.mubr.f32.gmra.mxu0 %v2129_v35  ;;  %467 = vmatprep.subr.mxu1 %v371_v47 }
  0x7e   :  { %255 = vmatprep.mubr.f32.mxu0 %v2046_v0  ;;  %1457 = vmatpush3.msra.mxu0 %v327_v46 }
  0x7f   :  { %1458 = vmatprep.subr.mxu0 %v372_v48  ;;  %468 = vmatpush2.msra.mxu1 %v370_v51 }
  0x80   :  { %1459 = vmatpush3.msra.mxu0 %v324_v52  ;;  %469 = vmatprep.subr.mxu1 %v368_v53 }
  0x81   :  { %256 = vmatmul.mubr.f32.gmra.mxu0 %v2133_v42  ;;  %1460 = vmatprep.subr.mxu0 %v369_v54 }
  0x82   :  { %261 = vmatprep.mubr.f32.mxu0 %v2046_v0  ;;  %470 = vmatpush2.msra.mxu1 %v367_v55 }
  0x83   :  { %1461 = vmatpush3.msra.mxu0 %v321_v56  ;;  %471 = vmatprep.subr.mxu1 %v365_v58 }
  0x84   :  { %1462 = vmatprep.subr.mxu0 %v366_v59  ;;  %472 = vmatpush2.msra.mxu1 %v364_v60 }
  0x85   :  { %262 = vmatmul.mubr.f32.gmra.mxu0 %v2137_v50  ;;  %473 = vmatprep.subr.mxu1 %v362_v62 }
  0x86   :  { %267 = vmatprep.mubr.f32.mxu0 %v2046_v0  ;;  %1463 = vmatpush3.msra.mxu0 %v318_v61 }
  0x87   :  { %1464 = vmatprep.subr.mxu0 %v363_v63  ;;  %474 = vmatpush2.msra.mxu1 %v361_v2 }
  0x88   :  { %1465 = vmatpush3.msra.mxu0 %v315_v3  ;;  %475 = vmatprep.subr.mxu1 %v359_v4 }
  0x89   :  { %268 = vmatmul.mubr.f32.gmra.mxu0 %v2141_v57  ;;  %1466 = vmatprep.subr.mxu0 %v360_v5 }
  0x8a   :  { %273 = vmatprep.mubr.f32.mxu0 %v2046_v0  ;;  %476 = vmatpush2.msra.mxu1 %v358_v6 }
  0x8b   :  { %1467 = vmatpush3.msra.mxu0 %v312_v7  ;;  %477 = vmatprep.subr.mxu1 %v356_v12 }
  0x8c   :  { %1468 = vmatprep.subr.mxu0 %v357_v13  ;;  %478 = vmatpush2.msra.mxu1 %v355_v14 }
  0x8d   :  { %274 = vmatmul.mubr.f32.gmra.mxu0 %v2145_v1  ;;  %479 = vmatprep.subr.mxu1 %v353_v16  ;;  %v2199_v16 = vld [vmem:[#allocation10 + $0x78] sm:$0xff] }
  0x8e   :  { %279 = vmatprep.mubr.f32.mxu0 %v2046_v0  ;;  %1469 = vmatpush3.msra.mxu0 %v309_v15 }
  0x8f   :  { %1470 = vmatprep.subr.mxu0 %v354_v17  ;;  %480 = vmatpush2.msra.mxu1 %v352_v18  ;;  %v2201_v17 = vld [vmem:[#allocation10 + $0x70] sm:$0xff] }
  0x90   :  { %1471 = vmatpush3.msra.mxu0 %v306_v19  ;;  %v2207_v19 = vld [vmem:[#allocation10 + $0x68] sm:$0xff] }
  0x91   :  { %280 = vmatmul.mubr.f32.gmra.mxu0 %v2149_v8  ;;  %1640 = vmatprep.subr.mxu0 %v2199_v16 }
  0x92   :  { %285 = vmatprep.mubr.f32.mxu0 %v2046_v0 }
  0x95   :  { %286 = vmatmul.mubr.f32.gmra.mxu0 %v2153_v9 }
  0x96   :  { %291 = vmatprep.mubr.f32.mxu0 %v2046_v0 }
  0x99   :  { %292 = vmatmul.mubr.f32.gmra.mxu0 %v2157_v10 }
  0x9a   :  { %297 = vmatprep.mubr.f32.mxu0 %v2046_v0 }
  0x9d   :  { %298 = vmatmul.mubr.f32.gmra.mxu0 %v2161_v11 }
 0x121   :  { %v209_v0 = vpop.f32.mrf.mxu0 }
 0x123   :  { %v211_v20 = vpop.f32.mrf.mxu0 }
 0x124   :  { %481 = vmatprep.mubr.f32.mxu1 %v211_v20  ;;  %642 = vmatprep.mubr.f32.mxu0 %v211_v20  ;;  %v2213_v20 = vld [vmem:[#allocation10 + $0x60] sm:$0xff] }
 0x125   :  { %v215_v22 = vpop.f32.mrf.mxu0  ;;  %482 = vmatmul.mubr.f32.vlgmr.msra.gmra.mxu1 %v209_v0  ;;  %643 = vmatmul.mubr.f32.vlgmr.msra.gmra.mxu0 %v209_v0 }
 0x126   :  { %1641 = vmatpush3.msra.mxu0 %v2199_v16 }
 0x127   :  { %v217_v23 = vpop.f32.mrf.mxu0  ;;  %1642 = vmatprep.subr.mxu0 %v2201_v17 }
 0x128   :  { %487 = vmatprep.mubr.f32.mxu1 %v217_v23  ;;  %647 = vmatprep.mubr.f32.mxu0 %v217_v23  ;;  %v2217_v23 = vld [vmem:[#allocation10 + $0x58] sm:$0xff] }
 0x129   :  { %v221_v24 = vpop.f32.mrf.mxu0  ;;  %488 = vmatmul.mubr.f32.gmra.mxu1 %v215_v22  ;;  %648 = vmatmul.mubr.f32.gmra.mxu0 %v215_v22 }
 0x12a   :  { %1643 = vmatpush3.msra.mxu0 %v2201_v17 }
 0x12b   :  { %v223_v25 = vpop.f32.mrf.mxu0  ;;  %1644 = vmatprep.subr.mxu0 %v2207_v19 }
 0x12c   :  { %493 = vmatprep.mubr.f32.mxu1 %v223_v25  ;;  %652 = vmatprep.mubr.f32.mxu0 %v223_v25  ;;  %v2223_v25 = vld [vmem:[#allocation10 + $0x50] sm:$0xff] }
 0x12d   :  { %v227_v26 = vpop.f32.mrf.mxu0  ;;  %494 = vmatmul.mubr.f32.gmra.mxu1 %v221_v24  ;;  %653 = vmatmul.mubr.f32.gmra.mxu0 %v221_v24 }
 0x12e   :  { %1645 = vmatpush3.msra.mxu0 %v2207_v19 }
 0x12f   :  { %v229_v27 = vpop.f32.mrf.mxu0  ;;  %1646 = vmatprep.subr.mxu0 %v2213_v20 }
 0x130   :  { %499 = vmatprep.mubr.f32.mxu1 %v229_v27  ;;  %657 = vmatprep.mubr.f32.mxu0 %v229_v27  ;;  %v2227_v27 = vld [vmem:[#allocation10 + $0x48] sm:$0xff] }
 0x131   :  { %v233_v29 = vpop.f32.mrf.mxu0  ;;  %500 = vmatmul.mubr.f32.gmra.mxu1 %v227_v26  ;;  %658 = vmatmul.mubr.f32.gmra.mxu0 %v227_v26 }
 0x132   :  { %1647 = vmatpush3.msra.mxu0 %v2213_v20 }
 0x133   :  { %v235_v30 = vpop.f32.mrf.mxu0  ;;  %1648 = vmatprep.subr.mxu0 %v2217_v23 }
 0x134   :  { %505 = vmatprep.mubr.f32.mxu1 %v235_v30  ;;  %662 = vmatprep.mubr.f32.mxu0 %v235_v30  ;;  %v2233_v30 = vld [vmem:[#allocation10 + $0x40] sm:$0xff] }
 0x135   :  { %v239_v31 = vpop.f32.mrf.mxu0  ;;  %506 = vmatmul.mubr.f32.gmra.mxu1 %v233_v29  ;;  %663 = vmatmul.mubr.f32.gmra.mxu0 %v233_v29 }
 0x136   :  { %1649 = vmatpush3.msra.mxu0 %v2217_v23 }
 0x137   :  { %v241_v32 = vpop.f32.mrf.mxu0  ;;  %1650 = vmatprep.subr.mxu0 %v2223_v25 }
 0x138   :  { %511 = vmatprep.mubr.f32.mxu1 %v241_v32  ;;  %667 = vmatprep.mubr.f32.mxu0 %v241_v32 }
 0x139   :  { %v245_v33 = vpop.f32.mrf.mxu0  ;;  %512 = vmatmul.mubr.f32.gmra.mxu1 %v239_v31  ;;  %668 = vmatmul.mubr.f32.gmra.mxu0 %v239_v31  ;;  %v402_v31 = vlaneseq }
 0x13a   :  { %1651 = vmatpush3.msra.mxu0 %v2223_v25 }
 0x13b   :  { %v247_v34 = vpop.f32.mrf.mxu0  ;;  %1652 = vmatprep.subr.mxu0 %v2227_v27 }
 0x13c   :  { %517 = vmatprep.mubr.f32.mxu1 %v247_v34  ;;  %672 = vmatprep.mubr.f32.mxu0 %v247_v34 }
 0x13d   :  { %v251_v36 = vpop.f32.mrf.mxu0  ;;  %518 = vmatmul.mubr.f32.gmra.mxu1 %v245_v33  ;;  %673 = vmatmul.mubr.f32.gmra.mxu0 %v245_v33  ;;  %v2237_v33 = vld [vmem:[#allocation10 + $0x38] sm:$0xff] }
 0x13e   :  { %1653 = vmatpush3.msra.mxu0 %v2227_v27 }
 0x13f   :  { %v253_v37 = vpop.f32.mrf.mxu0  ;;  %1654 = vmatprep.subr.mxu0 %v2233_v30 }
 0x140   :  { %523 = vmatprep.mubr.f32.mxu1 %v253_v37  ;;  %677 = vmatprep.mubr.f32.mxu0 %v253_v37  ;;  %v2246_v37 = vshrl.u32 %v402_v31, 7 }
 0x141   :  { %v257_v38 = vpop.f32.mrf.mxu0  ;;  %524 = vmatmul.mubr.f32.gmra.mxu1 %v251_v36  ;;  %678 = vmatmul.mubr.f32.gmra.mxu0 %v251_v36  ;;  %v2243_v36 = vld [vmem:[#allocation10 + $0x30] sm:$0xff] }
 0x142   :  { %1655 = vmatpush3.msra.mxu0 %v2233_v30 }
 0x143   :  { %v259_v39 = vpop.f32.mrf.mxu0  ;;  %1656 = vmatprep.subr.mxu0 %v2237_v33 }
 0x144   :  { %529 = vmatprep.mubr.f32.mxu1 %v259_v39  ;;  %682 = vmatprep.mubr.f32.mxu0 %v259_v39  ;;  %v2249_v39 = vld [vmem:[#allocation10 + $0x28] sm:$0xff] }
 0x145   :  { %v263_v40 = vpop.f32.mrf.mxu0  ;;  %530 = vmatmul.mubr.f32.gmra.mxu1 %v257_v38  ;;  %683 = vmatmul.mubr.f32.gmra.mxu0 %v257_v38 }
 0x146   :  { %1657 = vmatpush3.msra.mxu0 %v2237_v33 }
 0x147   :  { %v265_v41 = vpop.f32.mrf.mxu0  ;;  %1658 = vmatprep.subr.mxu0 %v2243_v36 }
 0x148   :  { %535 = vmatprep.mubr.f32.mxu1 %v265_v41  ;;  %687 = vmatprep.mubr.f32.mxu0 %v265_v41 }
 0x149   :  { %v269_v43 = vpop.f32.mrf.mxu0  ;;  %536 = vmatmul.mubr.f32.gmra.mxu1 %v263_v40  ;;  %688 = vmatmul.mubr.f32.gmra.mxu0 %v263_v40  ;;  %v408_v40 = vsub.s32 1, %v2246_v37 }
 0x14a   :  { %1659 = vmatpush3.msra.mxu0 %v2243_v36 }
 0x14b   :  { %v271_v44 = vpop.f32.mrf.mxu0  ;;  %1660 = vmatprep.subr.mxu0 %v2249_v39 }
 0x14c   :  { %541 = vmatprep.mubr.f32.mxu1 %v271_v44  ;;  %692 = vmatprep.mubr.f32.mxu0 %v271_v44 }
 0x14d   :  { %v275_v45 = vpop.f32.mrf.mxu0  ;;  %542 = vmatmul.mubr.f32.gmra.mxu1 %v269_v43  ;;  %693 = vmatmul.mubr.f32.gmra.mxu0 %v269_v43  ;;  %v2256_v43 = vld [vmem:[#allocation10 + $0x20] sm:$0xff] }
 0x14e   :  { %1661 = vmatpush3.msra.mxu0 %v2249_v39 }
 0x14f   :  { %v277_v46 = vpop.f32.mrf.mxu0  ;;  %1662 = vmatprep.subr.mxu0 %v2256_v43 }
 0x150   :  { %547 = vmatprep.mubr.f32.mxu1 %v277_v46  ;;  %697 = vmatprep.mubr.f32.mxu0 %v277_v46  ;;  %v2265_v46 = vld [vmem:[%s2618_s5] sm:$0x7] }
 0x151   :  { %v281_v47 = vpop.f32.mrf.mxu0  ;;  %548 = vmatmul.mubr.f32.gmra.mxu1 %v275_v45  ;;  %698 = vmatmul.mubr.f32.gmra.mxu0 %v275_v45  ;;  %v2260_v45 = vld [vmem:[#allocation10 + $0x18] sm:$0xff] }
 0x152   :  { %1663 = vmatpush3.msra.mxu0 %v2256_v43 }
 0x153   :  { %v283_v48 = vpop.f32.mrf.mxu0  ;;  %1664 = vmatprep.subr.mxu0 %v2260_v45 }
 0x154   :  { %553 = vmatprep.mubr.f32.mxu1 %v283_v48  ;;  %702 = vmatprep.mubr.f32.mxu0 %v283_v48 }
 0x155   :  { %v287_v51 = vpop.f32.mrf.mxu0  ;;  %554 = vmatmul.mubr.f32.gmra.mxu1 %v281_v47  ;;  %703 = vmatmul.mubr.f32.gmra.mxu0 %v281_v47  ;;  %v409_v47 = vrot.slane %v2265_v46, %v408_v40 }
 0x156   :  { %1665 = vmatpush3.msra.mxu0 %v2260_v45 }
 0x157   :  { %v289_v52 = vpop.f32.mrf.mxu0 }
 0x158   :  { %559 = vmatprep.mubr.f32.mxu1 %v289_v52  ;;  %707 = vmatprep.mubr.f32.mxu0 %v289_v52 }
 0x159   :  { %v293_v53 = vpop.f32.mrf.mxu0  ;;  %560 = vmatmul.mubr.f32.gmra.mxu1 %v287_v51  ;;  %708 = vmatmul.mubr.f32.gmra.mxu0 %v287_v51  ;;  %v2272_v51 = vld [vmem:[#allocation10 + $0x10] sm:$0xff] }
 0x15a   :  { %1666 = vmatprep.subr.mxu0 %v2272_v51 }
 0x15b   :  { %v295_v54 = vpop.f32.mrf.mxu0  ;;  %1667 = vmatpush3.msra.mxu0 %v2272_v51 }
 0x15c   :  { %565 = vmatprep.mubr.f32.mxu1 %v295_v54  ;;  %712 = vmatprep.mubr.f32.mxu0 %v295_v54 }
 0x15d   :  { %v299_v55 = vpop.f32.mrf.mxu0  ;;  %566 = vmatmul.mubr.f32.gmra.mxu1 %v293_v53  ;;  %713 = vmatmul.mubr.f32.gmra.mxu0 %v293_v53 }
 0x15f   :  { %v301_v56 = vpop.f32.mrf.mxu0 }
 0x160   :  { %571 = vmatprep.mubr.f32.mxu1 %v301_v56  ;;  %717 = vmatprep.mubr.f32.mxu0 %v301_v56 }
 0x161   :  { %572 = vmatmul.mubr.f32.gmra.mxu1 %v299_v55  ;;  %718 = vmatmul.mubr.f32.gmra.mxu0 %v299_v55 }
 0x162   :  { %1616 = vmatprep.mubr.f32.mxu1 %v2113_v49 }
 0x1e5   :  { %v2165_v58 = vpop.f32.mrf.mxu1 }
 0x1e7   :  { %v2167_v59 = vpop.f32.mrf.mxu1 }
 0x1e9   :  { %v2169_v60 = vpop.f32.mrf.mxu1 }
 0x1eb   :  { %v2171_v61 = vpop.f32.mrf.mxu1 }
 0x1ed   :  { %v2173_v62 = vpop.f32.mrf.mxu1 }
 0x1ef   :  { %v2175_v63 = vpop.f32.mrf.mxu1 }
 0x1f1   :  { %v2177_v2 = vpop.f32.mrf.mxu1 }
 0x1f3   :  { %v2179_v3 = vpop.f32.mrf.mxu1 }
 0x1f5   :  { %v2181_v4 = vpop.f32.mrf.mxu1 }
 0x1f7   :  { %v2183_v5 = vpop.f32.mrf.mxu1 }
 0x1f9   :  { %v2185_v49 = vpop.f32.mrf.mxu1 }
 0x1fb   :  { %v2187_v6 = vpop.f32.mrf.mxu1 }
 0x1fd   :  { %v2189_v7 = vpop.f32.mrf.mxu1 }
 0x1ff   :  { %v2191_v12 = vpop.f32.mrf.mxu1 }
 0x201   :  { %v2193_v13 = vpop.f32.mrf.mxu1 }
 0x202   :  { %2625 = vst [vmem:[#allocation16_spill] sm:$0xff] %v2193_v13 }
 0x203   :  { %v2195_v14 = vpop.f32.mrf.mxu1 }
 0x205   :  { %v2197_v15 = vpop.f32.mrf.mxu1 }
 0x206   :  { %2626 = vst [vmem:[#allocation17_spill] sm:$0xff] %v2197_v15 }
 0x207   :  { %v2204_v18 = vpop.f32.mrf.mxu1 }
 0x209   :  { %v2210_v0 = vpop.f32.mrf.mxu1 }
 0x20a   :  { %2627 = vst [vmem:[#allocation18_spill] sm:$0xff] %v2210_v0 }
 0x20b   :  { %v539_v22 = vpop.f32.mrf.mxu1 }
 0x20c   :  { %v540_v0 = vadd.f32 %v539_v22, %v409_v47 }
 0x20d   :  { %v2220_v24 = vpop.f32.mrf.mxu1 }
 0x20e   :  { %2628 = vst [vmem:[#allocation19_spill] sm:$0xff] %v2220_v24  ;;  %v1432_v13 = vmul.f32 -1.442695, %v540_v0 }
 0x20f   :  { %v545_v26 = vpop.f32.mrf.mxu1 }
 0x210   :  { %v546_v24 = vadd.f32 %v545_v26, %v409_v47  ;;  %v510_v26 = vadd.f32 %v2183_v5, %v409_v47  ;;  %v492_v5 = vadd.f32 %v2171_v61, %v409_v47 }
 0x211   :  { %v2230_v29 = vpop.f32.mrf.mxu1 }
 0x212   :  { %2629 = vst [vmem:[#allocation20_spill] sm:$0xff] %v2230_v29 }
 0x213   :  { %v551_v32 = vpop.f32.mrf.mxu1 }
 0x214   :  { %v552_v40 = vadd.f32 %v551_v32, %v409_v47  ;;  %v522_v32 = vadd.f32 %v2191_v12, %v409_v47 }
 0x215   :  { %v2240_v34 = vpop.f32.mrf.mxu1 }
 0x216   :  { %2630 = vst [vmem:[#allocation21_spill] sm:$0xff] %v2240_v34  ;;  %v1434_v15 = vmul.f32 -1.442695, %v552_v40 }
 0x217   :  { %v557_v38 = vpop.f32.mrf.mxu1 }
 0x218   :  { %v558_v54 = vadd.f32 %v557_v38, %v409_v47  ;;  %v534_v38 = vadd.f32 %v2204_v18, %v409_v47  ;;  %v504_v18 = vadd.f32 %v2179_v3, %v409_v47  ;;  %v486_v3 = vadd.f32 %v2167_v59, %v409_v47 }
 0x219   :  { %v2253_v41 = vpop.f32.mrf.mxu1 }
 0x21a   :  { %2631 = vst [vmem:[#allocation22_spill] sm:$0xff] %v2253_v41  ;;  %v1435_v34 = vmul.f32 -1.442695, %v558_v54 }
 0x21b   :  { %v563_v44 = vpop.f32.mrf.mxu1 }
 0x21c   :  { %v564_v52 = vadd.f32 %v563_v44, %v409_v47 }
 0x21d   :  { %v2269_v48 = vpop.f32.mrf.mxu1 }
 0x21e   :  { %2632 = vst [vmem:[#allocation23_spill] sm:$0xff] %v2269_v48  ;;  %v1436_v48 = vmul.f32 -1.442695, %v564_v52  ;;  %v1431_v52 = vmul.f32 -1.442695, %v534_v38 }
 0x21f   :  { %v569_v53 = vpop.f32.mrf.mxu1 }
 0x220   :  { %v570_v55 = vadd.f32 %v569_v53, %v409_v47  ;;  %v1433_v53 = vmul.f32 -1.442695, %v546_v24  ;;  %v1427_v24 = vmul.f32 -1.442695, %v510_v26 }
 0x221   :  { %v2277_v56 = vpop.f32.mrf.mxu1 }
 0x222   :  { %2633 = vst [vmem:[#allocation24_spill] sm:$0xff] %v2277_v56  ;;  %v1437_v31 = vmul.f32 -1.442695, %v570_v55  ;;  %v528_v56 = vadd.f32 %v2195_v14, %v409_v47 }
 0x223   :  { %v575_v41 = vpop.f32.mrf.mxu1 }
 0x224   :  { %v576_v29 = vadd.f32 %v575_v41, %v409_v47  ;;  %1741 = vpow2.f32 %v1437_v31  ;;  %v1430_v22 = vmul.f32 -1.442695, %v528_v56  ;;  %v1429_v41 = vmul.f32 -1.442695, %v522_v32 }
 0x225   :  { %1743 = vpow2.f32 %v1436_v48  ;;  %v1423_v32 = vmul.f32 -1.442695, %v486_v3 }
 0x226   :  { %v1438_v44 = vmul.f32 -1.442695, %v576_v29  ;;  %1745 = vpow2.f32 %v1435_v34  ;;  %v516_v29 = vadd.f32 %v2187_v6, %v409_v47  ;;  %v1426_v6 = vmul.f32 -1.442695, %v504_v18  ;;  %v930_v18 = vld [vmem:[#allocation7 + $0x78] sm:$0xff] }
 0x228   :  { %1747 = vpow2.f32 %v1438_v44  ;;  %v1428_v48 = vmul.f32 -1.442695, %v516_v29 }
 0x229   :  { %1749 = vpow2.f32 %v1434_v15  ;;  %v498_v15 = vadd.f32 %v2175_v63, %v409_v47  ;;  %v1424_v63 = vmul.f32 -1.442695, %v492_v5 }
 0x22a   :  { %1751 = vpow2.f32 %v1433_v53 }
 0x22b   :  { %1753 = vpow2.f32 %v1432_v13  ;;  %v1425_v31 = vmul.f32 -1.442695, %v498_v15  ;;  %v929_v15 = vld [vmem:[#allocation7 + $0x70] sm:$0xff] }
 0x22c   :  { %1755 = vpow2.f32 %v1431_v52 }
 0x22d   :  { %1757 = vpow2.f32 %v1430_v22 }
 0x22e   :  { %1759 = vpow2.f32 %v1429_v41 }
 0x22f   :  { %1761 = vpow2.f32 %v1427_v24 }
 0x230   :  { %1763 = vpow2.f32 %v1428_v48 }
 0x231   :  { %v1742_v34 = vpop.eup %1741 }
 0x232   :  { %v1744_v14 = vpop.eup %1743  ;;  %v881_v12 = vadd.f32 1.0, %v1742_v34 }
 0x233   :  { %v1746_v0 = vpop.eup %1745  ;;  %v880_v13 = vadd.f32 1.0, %v1744_v14 }
 0x234   :  { %1765 = vrcp.f32 %v881_v12  ;;  %v879_v40 = vadd.f32 1.0, %v1746_v0 }
 0x235   :  { %v1748_v54 = vpop.eup %1747 }
 0x236   :  { %v882_v55 = vadd.f32 1.0, %v1748_v54  ;;  %v1750_v56 = vpop.eup %1749 }
 0x237   :  { %v1752_v44 = vpop.eup %1751  ;;  %v878_v38 = vadd.f32 1.0, %v1750_v56 }
 0x238   :  { %1767 = vrcp.f32 %v882_v55  ;;  %v1754_v53 = vpop.eup %1753  ;;  %v877_v61 = vadd.f32 1.0, %v1752_v44 }
 0x239   :  { %1769 = vpow2.f32 %v1426_v6  ;;  %v1756_v52 = vpop.eup %1755  ;;  %v876_v26 = vadd.f32 1.0, %v1754_v53  ;;  %v2289_v6 = vld [vmem:[#allocation7 + $0x68] sm:$0xff]  ;;  %v2294_v53 = vld [vmem:[#allocation7 + $0x58] sm:$0xff] }
 0x23a   :  { %1771 = vrcp.f32 %v880_v13  ;;  %v1758_v29 = vpop.eup %1757  ;;  %v875_v59 = vadd.f32 1.0, %v1756_v52  ;;  %2634 = vst [vmem:[#allocation25_spill] sm:$0xff] %v2289_v6 }
 0x23b   :  { %1773 = vpow2.f32 %v1425_v31  ;;  %v1760_v47 = vpop.eup %1759  ;;  %v874_v41 = vadd.f32 1.0, %v1758_v29  ;;  %v2291_v31 = vld [vmem:[#allocation7 + $0x60] sm:$0xff]  ;;  %v2297_v29 = vld [vmem:[#allocation7 + $0x50] sm:$0xff] }
 0x23c   :  { %1775 = vrcp.f32 %v879_v40  ;;  %v1762_v22 = vpop.eup %1761  ;;  %v873_v48 = vadd.f32 1.0, %v1760_v47  ;;  %2635 = vst [vmem:[#allocation26_spill] sm:$0xff] %v2291_v31 }
 0x23d   :  { %1777 = vpow2.f32 %v1424_v63  ;;  %v1764_v34 = vpop.eup %1763  ;;  %v871_v55 = vadd.f32 1.0, %v1762_v22 }
 0x23e   :  { %1779 = vrcp.f32 %v878_v38  ;;  %v872_v0 = vadd.f32 1.0, %v1764_v34 }
 0x23f   :  { %1781 = vpow2.f32 %v1423_v32 }
 0x240   :  { %1783 = vrcp.f32 %v877_v61 }
 0x241   :  { %1785 = vrcp.f32 %v876_v26  ;;  %v1766_v24 = vpop.eup %1765 }
 0x242   :  { %1787 = vrcp.f32 %v875_v59  ;;  %v945_v56 = vmul.f32 %v1766_v24, %v929_v15 }
 0x243   :  { %1789 = vrcp.f32 %v874_v41  ;;  %v2300_v41 = vld [vmem:[#allocation7 + $0x48] sm:$0xff] }
 0x244   :  { %1791 = vrcp.f32 %v873_v48  ;;  %v2303_v48 = vld [vmem:[#allocation7 + $0x40] sm:$0xff] }
 0x245   :  { %v1768_v14 = vpop.eup %1767  ;;  %1793 = vrcp.f32 %v872_v0 }
 0x246   :  { %v1770_v12 = vpop.eup %1769  ;;  %v946_v54 = vmul.f32 %v1768_v14, %v930_v18  ;;  %1795 = vrcp.f32 %v871_v55 }
 0x247   :  { %v1772_v5 = vpop.eup %1771  ;;  %v870_v44 = vadd.f32 1.0, %v1770_v12  ;;  %v2306_v12 = vld [vmem:[#allocation7 + $0x38] sm:$0xff] }
 0x248   :  { %v1774_v13 = vpop.eup %1773  ;;  %1584 = vmatprep.subr.mxu1 %v946_v54  ;;  %v944_v63 = vmul.f32 %v1772_v5, %v2289_v6  ;;  %v2309_v5 = vld [vmem:[#allocation7 + $0x30] sm:$0xff] }
 0x249   :  { %v1776_v3 = vpop.eup %1775  ;;  %1585 = vmatpush3.msra.mxu1 %v946_v54  ;;  %v869_v61 = vadd.f32 1.0, %v1774_v13  ;;  %1797 = vrcp.f32 %v870_v44  ;;  %v2315_v44 = vld [vmem:[#allocation7 + $0x20] sm:$0xff] }
 0x24a   :  { %v1778_v40 = vpop.eup %1777  ;;  %1586 = vmatprep.subr.mxu1 %v945_v56  ;;  %v943_v52 = vmul.f32 %v1776_v3, %v2291_v31 }
 0x24b   :  { %v1780_v38 = vpop.eup %1779  ;;  %1587 = vmatpush3.msra.mxu1 %v945_v56  ;;  %v868_v59 = vadd.f32 1.0, %v1778_v40  ;;  %1799 = vrcp.f32 %v869_v61  ;;  %v2312_v56 = vld [vmem:[#allocation7 + $0x28] sm:$0xff] }
 0x24c   :  { %v1782_v32 = vpop.eup %1781  ;;  %1588 = vmatprep.subr.mxu1 %v944_v63  ;;  %v942_v47 = vmul.f32 %v1780_v38, %v2294_v53 }
 0x24d   :  { %v1784_v26 = vpop.eup %1783  ;;  %1589 = vmatpush3.msra.mxu1 %v944_v63  ;;  %v867_v34 = vadd.f32 1.0, %v1782_v32  ;;  %1801 = vrcp.f32 %v868_v59  ;;  %v2318_v32 = vld [vmem:[#allocation7 + $0x18] sm:$0xff] }
 0x24e   :  { %1590 = vmatprep.subr.mxu1 %v943_v52  ;;  %v1786_v22 = vpop.eup %1785  ;;  %v941_v18 = vmul.f32 %v1784_v26, %v2297_v29  ;;  %v2321_v26 = vld [vmem:[#allocation7 + $0x10] sm:$0xff] }
 0x24f   :  { %1591 = vmatpush3.msra.mxu1 %v943_v52  ;;  %v1788_v24 = vpop.eup %1787  ;;  %v940_v14 = vmul.f32 %v1786_v22, %v2300_v41  ;;  %1803 = vrcp.f32 %v867_v34  ;;  %v2324_v22 = vld [vmem:[#allocation7 + $0x8] sm:$0xff] }
 0x250   :  { %1592 = vmatprep.subr.mxu1 %v942_v47  ;;  %v1790_v15 = vpop.eup %1789  ;;  %v939_v0 = vmul.f32 %v1788_v24, %v2303_v48  ;;  %v2327_v24 = vld [vmem:[#allocation7] sm:$0xff] }
 0x251   :  { %1593 = vmatpush3.msra.mxu1 %v942_v47  ;;  %v1792_v54 = vpop.eup %1791  ;;  %v938_v13 = vmul.f32 %v1790_v15, %v2306_v12 }
 0x252   :  { %1594 = vmatprep.subr.mxu1 %v941_v18  ;;  %v1794_v55 = vpop.eup %1793  ;;  %v937_v3 = vmul.f32 %v1792_v54, %v2309_v5  ;;  %v1902_v54 = vld [vmem:[#allocation2 + $0x10] sm:$0xff] }
 0x253   :  { %1595 = vmatpush3.msra.mxu1 %v941_v18  ;;  %v1796_v40 = vpop.eup %1795  ;;  %v936_v63 = vmul.f32 %v1794_v55, %v2312_v56  ;;  %v1904_v55 = vld [vmem:[#allocation2 + $0x20] sm:$0xff] }
 0x254   :  { %1596 = vmatprep.subr.mxu1 %v940_v14  ;;  %v935_v61 = vmul.f32 %v1796_v40, %v2315_v44 }
 0x255   :  { %1597 = vmatpush3.msra.mxu1 %v940_v14 }
 0x256   :  { %1598 = vmatprep.subr.mxu1 %v939_v0  ;;  %v1798_v38 = vpop.eup %1797 }
 0x257   :  { %1599 = vmatpush3.msra.mxu1 %v939_v0  ;;  %v934_v59 = vmul.f32 %v1798_v38, %v2318_v32  ;;  %v1901_v0 = vld [vmem:[#allocation2 + $0x8] sm:$0xff] }
 0x258   :  { %1600 = vmatprep.subr.mxu1 %v938_v13  ;;  %v1800_v52 = vpop.eup %1799 }
 0x259   :  { %1601 = vmatpush3.msra.mxu1 %v938_v13  ;;  %v933_v34 = vmul.f32 %v1800_v52, %v2321_v26  ;;  %v1903_v13 = vld [vmem:[#allocation2 + $0x18] sm:$0xff] }
 0x25a   :  { %1602 = vmatprep.subr.mxu1 %v937_v3  ;;  %v1802_v47 = vpop.eup %1801 }
 0x25b   :  { %1603 = vmatpush3.msra.mxu1 %v937_v3  ;;  %v932_v14 = vmul.f32 %v1802_v47, %v2324_v22 }
 0x25c   :  { %1604 = vmatprep.subr.mxu1 %v936_v63  ;;  %v1804_v18 = vpop.eup %1803 }
 0x25d   :  { %1605 = vmatpush3.msra.mxu1 %v936_v63  ;;  %v931_v15 = vmul.f32 %v1804_v18, %v2327_v24 }
 0x25e   :  { %1606 = vmatprep.subr.mxu1 %v935_v61 }
 0x25f   :  { %1607 = vmatpush3.msra.mxu1 %v935_v61 }
 0x260   :  { %1608 = vmatprep.subr.mxu1 %v934_v59 }
 0x261   :  { %1609 = vmatpush3.msra.mxu1 %v934_v59 }
 0x262   :  { %1610 = vmatprep.subr.mxu1 %v933_v34 }
 0x263   :  { %1611 = vmatpush3.msra.mxu1 %v933_v34 }
 0x264   :  { %1612 = vmatprep.subr.mxu1 %v932_v14 }
 0x265   :  { %1613 = vmatpush3.msra.mxu1 %v932_v14 }
 0x266   :  { %1614 = vmatprep.subr.mxu1 %v931_v15 }
 0x267   :  { %1615 = vmatpush3.msra.mxu1 %v931_v15 }
 0x268   :  { %1617 = vmatmul.mubr.f32.vlgmr.msra.gmra.mxu1 %v1901_v0  ;;  %1696 = vmatprep.subr.mxu1 %v2199_v16 }
 0x269   :  { %1619 = vmatprep.mubr.f32.mxu1 %v1902_v54  ;;  %1712 = vmatpush3.msra.mxu1 %v2199_v16 }
 0x26a   :  { %1697 = vmatprep.subr.mxu1 %v2201_v17 }
 0x26b   :  { %1713 = vmatpush3.msra.mxu1 %v2201_v17 }
 0x26c   :  { %1620 = vmatmul.mubr.f32.gmra.mxu1 %v1903_v13  ;;  %1698 = vmatprep.subr.mxu1 %v2207_v19  ;;  %v404_v13 = vsub.s32 0, %v2246_v37 }
 0x26d   :  { %1622 = vmatprep.mubr.f32.mxu1 %v1904_v55  ;;  %1714 = vmatpush3.msra.mxu1 %v2207_v19 }
 0x26e   :  { %1699 = vmatprep.subr.mxu1 %v2213_v20 }
 0x26f   :  { %1715 = vmatpush3.msra.mxu1 %v2213_v20 }
 0x270   :  { %1623 = vmatmul.mubr.f32.gmra.mxu1 %v2121_v21  ;;  %1700 = vmatprep.subr.mxu1 %v2217_v23  ;;  %v1093_v21 = vld [vmem:[#allocation10 + $0x8] sm:$0xff] }
 0x271   :  { %1625 = vmatprep.mubr.f32.mxu1 %v2125_v28  ;;  %1716 = vmatpush3.msra.mxu1 %v2217_v23  ;;  %v1092_v28 = vld [vmem:[#allocation10] sm:$0xff] }
 0x272   :  { %1701 = vmatprep.subr.mxu1 %v2223_v25  ;;  %1668 = vmatprep.subr.mxu0 %v1093_v21 }
 0x273   :  { %1717 = vmatpush3.msra.mxu1 %v2223_v25  ;;  %1669 = vmatpush3.msra.mxu0 %v1093_v21 }
 0x274   :  { %1626 = vmatmul.mubr.f32.gmra.mxu1 %v2129_v35  ;;  %1702 = vmatprep.subr.mxu1 %v2227_v27 }
 0x275   :  { %1628 = vmatprep.mubr.f32.mxu1 %v2133_v42  ;;  %1718 = vmatpush3.msra.mxu1 %v2227_v27 }
 0x276   :  { %1703 = vmatprep.subr.mxu1 %v2233_v30  ;;  %1670 = vmatprep.subr.mxu0 %v1092_v28 }
 0x277   :  { %1719 = vmatpush3.msra.mxu1 %v2233_v30  ;;  %1671 = vmatpush3.msra.mxu0 %v1092_v28  ;;  %v2370_v30 = vpop.f32.mrf.mxu0 }
 0x278   :  { %1629 = vmatmul.mubr.f32.gmra.mxu1 %v2137_v50  ;;  %1704 = vmatprep.subr.mxu1 %v2237_v33 }
 0x279   :  { %1631 = vmatprep.mubr.f32.mxu1 %v2141_v57  ;;  %1720 = vmatpush3.msra.mxu1 %v2237_v33  ;;  %v2372_v33 = vpop.f32.mrf.mxu0 }
 0x27a   :  { %1705 = vmatprep.subr.mxu1 %v2243_v36 }
 0x27b   :  { %1721 = vmatpush3.msra.mxu1 %v2243_v36  ;;  %v2374_v36 = vpop.f32.mrf.mxu0 }
 0x27c   :  { %1632 = vmatmul.mubr.f32.gmra.mxu1 %v2145_v1  ;;  %1706 = vmatprep.subr.mxu1 %v2249_v39 }
 0x27d   :  { %1634 = vmatprep.mubr.f32.mxu1 %v2149_v8  ;;  %1722 = vmatpush3.msra.mxu1 %v2249_v39  ;;  %v2376_v39 = vpop.f32.mrf.mxu0 }
 0x27e   :  { %1707 = vmatprep.subr.mxu1 %v2256_v43 }
 0x27f   :  { %1723 = vmatpush3.msra.mxu1 %v2256_v43  ;;  %v2378_v43 = vpop.f32.mrf.mxu0 }
 0x280   :  { %1635 = vmatmul.mubr.f32.gmra.mxu1 %v2153_v9  ;;  %1708 = vmatprep.subr.mxu1 %v2260_v45 }
 0x281   :  { %1637 = vmatprep.mubr.f32.mxu1 %v2157_v10  ;;  %1724 = vmatpush3.msra.mxu1 %v2260_v45  ;;  %v2380_v45 = vpop.f32.mrf.mxu0 }
 0x282   :  { %1709 = vmatprep.subr.mxu1 %v2272_v51 }
 0x283   :  { %1725 = vmatpush3.msra.mxu1 %v2272_v51  ;;  %v2382_v51 = vpop.f32.mrf.mxu0 }
 0x284   :  { %1638 = vmatmul.mubr.f32.gmra.mxu1 %v2161_v11  ;;  %1710 = vmatprep.subr.mxu1 %v1093_v21 }
 0x285   :  { %1726 = vmatpush3.msra.mxu1 %v1093_v21  ;;  %v2384_v3 = vpop.f32.mrf.mxu0  ;;  %v2416_v21 = vrot.slane %v2265_v46, %v404_v13 }
 0x286   :  { %1711 = vmatprep.subr.mxu1 %v1092_v28 }
 0x287   :  { %1727 = vmatpush3.msra.mxu1 %v1092_v28  ;;  %v2386_v40 = vpop.f32.mrf.mxu0 }
 0x289   :  { %v2388_v63 = vpop.f32.mrf.mxu0 }
 0x28b   :  { %v2390_v38 = vpop.f32.mrf.mxu0 }
 0x28d   :  { %v2392_v61 = vpop.f32.mrf.mxu0 }
 0x28f   :  { %v2394_v52 = vpop.f32.mrf.mxu0 }
 0x291   :  { %v2396_v59 = vpop.f32.mrf.mxu0 }
 0x293   :  { %v2398_v47 = vpop.f32.mrf.mxu0 }
 0x295   :  { %v2400_v34 = vpop.f32.mrf.mxu0 }
 0x297   :  { %v2402_v18 = vpop.f32.mrf.mxu0 }
 0x299   :  { %v2404_v14 = vpop.f32.mrf.mxu0 }
 0x29b   :  { %v2406_v15 = vpop.f32.mrf.mxu0 }
 0x29d   :  { %v2408_v0 = vpop.f32.mrf.mxu0 }
 0x29f   :  { %v2410_v54 = vpop.f32.mrf.mxu0 }
 0x2a1   :  { %v2413_v55 = vpop.f32.mrf.mxu0 }
 0x2a3   :  { %v2418_v28 = vpop.f32.mrf.mxu0 }
 0x328   :  { %v1618_v35 = vpop.f32.mrf.mxu1 }
 0x32a   :  { %v1013_v42 = vpop.f32.mrf.mxu1 }
 0x32b   :  { %1672 = vmatprep.mubr.f32.mxu0 %v1013_v42  ;;  %v2422_v42 = vpop.f32.mrf.mxu0 }
 0x32c   :  { %v1621_v50 = vpop.f32.mrf.mxu1  ;;  %1673 = vmatmul.mubr.f32.vlgmr.msra.gmra.mxu0 %v1618_v35  ;;  %v484_v35 = vadd.f32 %v2165_v58, %v2416_v21  ;;  %v508_v58 = vadd.f32 %v2181_v4, %v2416_v21 }
 0x32e   :  { %v1023_v57 = vpop.f32.mrf.mxu1 }
 0x32f   :  { %1675 = vmatprep.mubr.f32.mxu0 %v1023_v57  ;;  %v1407_v57 = vmul.f32 -1.442695, %v484_v35 }
 0x330   :  { %v1624_v1 = vpop.f32.mrf.mxu1  ;;  %1676 = vmatmul.mubr.f32.gmra.mxu0 %v1621_v50  ;;  %v490_v50 = vadd.f32 %v2169_v60, %v2416_v21  ;;  %v514_v60 = vadd.f32 %v2185_v49, %v2416_v21  ;;  %v2637_v49 = vld [vmem:[#allocation17_spill] sm:$0xff] }
 0x331   :  { %1805 = vpow2.f32 %v1407_v57  ;;  %v532_v35 = vadd.f32 %v2637_v49, %v2416_v21 }
 0x332   :  { %v1033_v8 = vpop.f32.mrf.mxu1 }
 0x333   :  { %1678 = vmatprep.mubr.f32.mxu0 %v1033_v8  ;;  %v2428_v8 = vpop.f32.mrf.mxu0 }
 0x334   :  { %v1627_v9 = vpop.f32.mrf.mxu1  ;;  %1679 = vmatmul.mubr.f32.gmra.mxu0 %v1624_v1  ;;  %v496_v1 = vadd.f32 %v2173_v62, %v2416_v21  ;;  %v1411_v62 = vmul.f32 -1.442695, %v508_v58 }
 0x336   :  { %v1043_v10 = vpop.f32.mrf.mxu1 }
 0x337   :  { %1681 = vmatprep.mubr.f32.mxu0 %v1043_v10  ;;  %v502_v10 = vadd.f32 %v2177_v2, %v2416_v21  ;;  %v1412_v2 = vmul.f32 -1.442695, %v514_v60 }
 0x338   :  { %v1630_v11 = vpop.f32.mrf.mxu1  ;;  %1682 = vmatmul.mubr.f32.gmra.mxu0 %v1627_v9  ;;  %v1408_v9 = vmul.f32 -1.442695, %v490_v50 }
 0x33a   :  { %v1053_v16 = vpop.f32.mrf.mxu1  ;;  %1807 = vpow2.f32 %v1408_v9 }
 0x33b   :  { %1684 = vmatprep.mubr.f32.mxu1 %v1053_v16  ;;  %v2434_v16 = vpop.f32.mrf.mxu0 }
 0x33c   :  { %v1633_v17 = vpop.f32.mrf.mxu1  ;;  %1685 = vmatmul.mubr.f32.vlgmr.msra.gmra.mxu1 %v1630_v11  ;;  %v1409_v11 = vmul.f32 -1.442695, %v496_v1 }
 0x33e   :  { %v1063_v19 = vpop.f32.mrf.mxu1  ;;  %1809 = vpow2.f32 %v1409_v11  ;;  %v1806_v50 = vpop.eup %1805  ;;  %v2639_v11 = vld [vmem:[#allocation19_spill] sm:$0xff] }
 0x33f   :  { %1687 = vmatprep.mubr.f32.mxu1 %v1063_v19  ;;  %v520_v19 = vadd.f32 %v2189_v7, %v2416_v21  ;;  %v2638_v7 = vld [vmem:[#allocation18_spill] sm:$0xff]  ;;  %v544_v58 = vadd.f32 %v2639_v11, %v2416_v21 }
 0x340   :  { %v1636_v20 = vpop.f32.mrf.mxu1  ;;  %1688 = vmatmul.mubr.f32.gmra.mxu1 %v1633_v17  ;;  %v1410_v17 = vmul.f32 -1.442695, %v502_v10  ;;  %v538_v57 = vadd.f32 %v2638_v7, %v2416_v21  ;;  %v1415_v10 = vmul.f32 -1.442695, %v532_v35  ;;  %v2641_v7 = vld [vmem:[#allocation21_spill] sm:$0xff]  ;;  %v412_v35 = vsub.s32 2, %v2246_v37 }
 0x341   :  { %v1413_v4 = vmul.f32 -1.442695, %v520_v19  ;;  %v2640_v19 = vld [vmem:[#allocation20_spill] sm:$0xff]  ;;  %v1417_v49 = vmul.f32 -1.442695, %v544_v58  ;;  %v556_v31 = vadd.f32 %v2641_v7, %v2416_v21  ;;  %v1474_v37 = vadd.f32 %v2372_v33, %v2370_v30 }
 0x342   :  { %v1073_v23 = vpop.f32.mrf.mxu1  ;;  %1811 = vpow2.f32 %v1410_v17  ;;  %v771_v17 = vadd.f32 1.0, %v1806_v50  ;;  %v1480_v30 = vadd.f32 %v2380_v45, %v2378_v43  ;;  %v1489_v45 = vadd.f32 %v2392_v61, %v2390_v38 }
 0x343   :  { %1690 = vmatprep.mubr.f32.mxu1 %v1073_v23  ;;  %v2636_v23 = vld [vmem:[#allocation16_spill] sm:$0xff]  ;;  %1813 = vpow2.f32 %v1411_v62  ;;  %v1416_v62 = vmul.f32 -1.442695, %v538_v57  ;;  %v2642_v57 = vld [vmem:[#allocation22_spill] sm:$0xff]  ;;  %v1419_v7 = vmul.f32 -1.442695, %v556_v31  ;;  %v1495_v61 = vadd.f32 %v2400_v34, %v2398_v47 }
 0x344   :  { %v1639_v25 = vpop.f32.mrf.mxu1  ;;  %1691 = vmatmul.mubr.f32.gmra.mxu1 %v1636_v20  ;;  %v2440_v20 = vpop.f32.mrf.mxu0  ;;  %1815 = vpow2.f32 %v1412_v2  ;;  %v550_v2 = vadd.f32 %v2640_v19, %v2416_v21  ;;  %v562_v6 = vadd.f32 %v2642_v57, %v2416_v21 }
 0x345   :  { %1817 = vpow2.f32 %v1413_v4 }
 0x346   :  { %v1083_v27 = vpop.f32.mrf.mxu1  ;;  %v1418_v50 = vmul.f32 -1.442695, %v550_v2  ;;  %v2472_v2 = vrot.slane %v2265_v46, %v412_v35  ;;  %v2484_v46 = vld [vmem:[%s2619_s6] ss:$0 sm:$0xff]  ;;  %s2047_s6 = smov [#allocation11]  }
 0x347   :  { %1693 = vmatprep.mubr.f32.mxu1 %v1083_v27  ;;  %v2444_v27 = vpop.f32.mrf.mxu0  ;;  %v1808_v9 = vpop.eup %1807  ;;  %s1393_s30 = sshll.u32 %s2047_s6, 4  ;;  %s1394_s30 = int_to_ptr.vmem [resolvable:$true] %s1393_s30 }
 0x348   :  { %1694 = vmatmul.mubr.f32.gmra.mxu1 %v1639_v25  ;;  %v526_v25 = vadd.f32 %v2636_v23, %v2416_v21  ;;  %s2007_s8 = scalar_lea.vmem %s1394_s30, 2048  ;;  %p2012_p12 = scmp.lt.s32.totalorder %s1394_s30, %s1394_s30 }
 0x349   :  { %v2450_v1 = vpop.f32.mrf.mxu0  ;;  %p2008_p11 = scmp.ne.s32.totalorder %s1394_s30, %s2007_s8  ;;  %p2013_p13 = scmp.lt.s32.totalorder %s2007_s8, %s2007_s8 }
 0x34a   :  { %v1414_v13 = vmul.f32 -1.442695, %v526_v25  ;;  %v772_v25 = vadd.f32 1.0, %v1808_v9  ;;  %v1477_v9 = vadd.f32 %v2376_v39, %v2374_v36  ;;  %v1420_v36 = vmul.f32 -1.442695, %v562_v6 }
 0x34b   :  { %v1810_v60 = vpop.eup %1809  ;;  %v2456_v23 = vpop.f32.mrf.mxu0  ;;  %p2014_p0 = por %p2013_p13, %p2012_p12 }
 0x34c   :  { %1819 = vpow2.f32 %v1414_v13  ;;  %v773_v13 = vadd.f32 1.0, %v1810_v60 }
 0x34d   :  { %1821 = vpow2.f32 %v1415_v10  ;;  %v2463_v19 = vpop.f32.mrf.mxu0  ;;  %p2015_p1 = pnand %p2014_p0, %p2008_p11 }
 0x34e   :  { %1823 = vrcp.f32 %v771_v17  ;;  %v2643_v17 = vld [vmem:[#allocation23_spill] sm:$0xff] }
 0x34f   :  { %v1812_v4 = vpop.eup %1811  ;;  %1825 = vpow2.f32 %v1416_v62  ;;  %v568_v60 = vadd.f32 %v2643_v17, %v2416_v21  ;;  %v2476_v39 = vpop.f32.mrf.mxu0 }
 0x350   :  { %v1814_v11 = vpop.eup %1813  ;;  %1827 = vrcp.f32 %v772_v25  ;;  %v774_v10 = vadd.f32 1.0, %v1812_v4  ;;  %v1483_v25 = vadd.f32 %v2384_v3, %v2382_v51  ;;  %v645_v3 = vadd.f32 %v1474_v37, %v2472_v2 }
 0x351   :  { %v1816_v58 = vpop.eup %1815  ;;  %1829 = vpow2.f32 %v1417_v49  ;;  %v775_v62 = vadd.f32 1.0, %v1814_v11  ;;  %v650_v49 = vadd.f32 %v1477_v9, %v2472_v2  ;;  %v1421_v33 = vmul.f32 -1.442695, %v568_v60  ;;  %v2644_v11 = vld [vmem:[#allocation24_spill] sm:$0xff] }
 0x352   :  { %1831 = vrcp.f32 %v773_v13  ;;  %v1818_v4 = vpop.eup %1817  ;;  %v776_v31 = vadd.f32 1.0, %v1816_v58  ;;  %v660_v43 = vadd.f32 %v1483_v25, %v2472_v2  ;;  %v1486_v58 = vadd.f32 %v2388_v63, %v2386_v40 }
 0x353   :  { %1833 = vpow2.f32 %v1418_v50  ;;  %v777_v35 = vadd.f32 1.0, %v1818_v4  ;;  %v574_v50 = vadd.f32 %v2644_v11, %v2416_v21  ;;  %v655_v60 = vadd.f32 %v1480_v30, %v2472_v2 }
 0x354   :  { %1835 = vrcp.f32 %v774_v10  ;;  %v1492_v21 = vadd.f32 %v2396_v59, %v2394_v52  ;;  %v1498_v30 = vadd.f32 %v2404_v14, %v2402_v18  ;;  %v1501_v11 = vadd.f32 %v2408_v0, %v2406_v15 }
 0x355   :  { %1837 = vpow2.f32 %v1419_v7  ;;  %v1422_v40 = vmul.f32 -1.442695, %v574_v50  ;;  %v680_v18 = vadd.f32 %v1495_v61, %v2472_v2 }
 0x356   :  { %1839 = vrcp.f32 %v775_v62  ;;  %v685_v15 = vadd.f32 %v1498_v30, %v2472_v2 }
 0x357   :  { %1841 = vpow2.f32 %v1420_v36 }
 0x358   :  { %1843 = vrcp.f32 %v776_v31 }
 0x359   :  { %v1820_v51 = vpop.eup %1819  ;;  %1845 = vpow2.f32 %v1421_v33 }
 0x35a   :  { %v778_v7 = vadd.f32 1.0, %v1820_v51  ;;  %v1822_v37 = vpop.eup %1821 }
 0x35b   :  { %v2499_v38 = vpop.eup %1823  ;;  %v779_v59 = vadd.f32 1.0, %v1822_v37 }
 0x35c   :  { %v1826_v36 = vpop.eup %1825 }
 0x35d   :  { %v2505_v52 = vpop.eup %1827 }
 0x35e   :  { %v1830_v47 = vpop.eup %1829 }
 0x3ec   :  { %v1674_v13 = vpop.f32.mrf.mxu0 }
 0x3ed   :  { %v1254_v6 = vadd.f32 %v1674_v13, %v650_v49  ;;  %v670_v49 = vadd.f32 %v1489_v45, %v2472_v2  ;;  %v665_v13 = vadd.f32 %v1486_v58, %v2472_v2  ;;  %v1504_v58 = vadd.f32 %v2413_v55, %v2410_v54 }
 0x3ee   :  { %v1174_v57 = vpop.f32.mrf.mxu0  ;;  %v690_v54 = vadd.f32 %v1501_v11, %v2472_v2 }
 0x3ef   :  { %v1277_v9 = vadd.f32 %v2484_v46, %v1254_v6  ;;  %v1253_v10 = vadd.f32 %v1174_v57, %v645_v3  ;;  %v675_v6 = vadd.f32 %v1492_v21, %v2472_v2  ;;  %v2512_v3 = vpop.eup %1831  ;;  %v1308_v57 = vsub.f32 1.0, %v2499_v38 }
 0x3f0   :  { %v1677_v17 = vpop.f32.mrf.mxu0  ;;  %v1834_v14 = vpop.eup %1833 }
 0x3f1   :  { %1847 = vtanh.f32 %v1277_v9  ;;  %v1276_v62 = vadd.f32 %v2484_v46, %v1253_v10  ;;  %v1256_v25 = vadd.f32 %v1677_v17, %v660_v43  ;;  %v2519_v9 = vpop.eup %1835  ;;  %v781_v10 = vadd.f32 1.0, %v1830_v47 }
 0x3f2   :  { %1849 = vrcp.f32 %v777_v35  ;;  %v1184_v63 = vpop.f32.mrf.mxu0  ;;  %v780_v35 = vadd.f32 1.0, %v1826_v36  ;;  %v1838_v0 = vpop.eup %1837  ;;  %v1309_v17 = vsub.f32 1.0, %v2505_v52 }
 0x3f3   :  { %1851 = vtanh.f32 %v1276_v62  ;;  %v1279_v4 = vadd.f32 %v2484_v46, %v1256_v25  ;;  %v1255_v31 = vadd.f32 %v1184_v63, %v655_v60  ;;  %v2526_v21 = vpop.eup %1839  ;;  %v782_v62 = vadd.f32 1.0, %v1834_v14 }
 0x3f4   :  { %1853 = vrcp.f32 %v778_v7  ;;  %v1680_v33 = vpop.f32.mrf.mxu0  ;;  %v1507_v25 = vadd.f32 %v2422_v42, %v2418_v28  ;;  %v1842_v55 = vpop.eup %1841  ;;  %v695_v28 = vadd.f32 %v1504_v58, %v2472_v2 }
 0x3f5   :  { %1855 = vtanh.f32 %v1279_v4  ;;  %v1278_v34 = vadd.f32 %v2484_v46, %v1255_v31  ;;  %v1258_v51 = vadd.f32 %v1680_v33, %v670_v49  ;;  %v2533_v4 = vpop.eup %1843  ;;  %v783_v31 = vadd.f32 1.0, %v1838_v0 }
 0x3f6   :  { %1857 = vpow2.f32 %v1422_v40  ;;  %v1194_v50 = vpop.f32.mrf.mxu0  ;;  %v1310_v40 = vsub.f32 1.0, %v2512_v3  ;;  %v1510_v49 = vadd.f32 %v2434_v16, %v2428_v8  ;;  %v1846_v42 = vpop.eup %1845  ;;  %v784_v47 = vadd.f32 1.0, %v1842_v55 }
 0x3f7   :  { %1859 = vtanh.f32 %v1278_v34  ;;  %v1281_v43 = vadd.f32 %v2484_v46, %v1258_v51  ;;  %v1257_v45 = vadd.f32 %v1194_v50, %v665_v13  ;;  %v1513_v34 = vadd.f32 %v2444_v27, %v2440_v20 }
 0x3f8   :  { %1861 = vrcp.f32 %v779_v59  ;;  %v1683_v7 = vpop.f32.mrf.mxu0  ;;  %v1311_v59 = vsub.f32 1.0, %v2519_v9  ;;  %v785_v14 = vadd.f32 1.0, %v1846_v42 }
 0x3f9   :  { %1863 = vtanh.f32 %v1281_v43  ;;  %v1280_v60 = vadd.f32 %v2484_v46, %v1257_v45  ;;  %v1260_v37 = vadd.f32 %v1683_v7, %v680_v18  ;;  %v1312_v18 = vsub.f32 1.0, %v2526_v21 }
 0x3fa   :  { %1865 = vrcp.f32 %v780_v35  ;;  %v1204_v61 = vpop.f32.mrf.mxu0  ;;  %v705_v45 = vadd.f32 %v1510_v49, %v2472_v2  ;;  %v1516_v7 = vadd.f32 %v2456_v23, %v2450_v1  ;;  %v1313_v49 = vsub.f32 1.0, %v2533_v4 }
 0x3fb   :  { %1867 = vtanh.f32 %v1280_v60  ;;  %v1283_v63 = vadd.f32 %v2484_v46, %v1260_v37  ;;  %v1259_v36 = vadd.f32 %v1204_v61, %v675_v6  ;;  %v700_v6 = vadd.f32 %v1507_v25, %v2472_v2 }
 0x3fc   :  { %1869 = vrcp.f32 %v781_v10  ;;  %v1686_v52 = vpop.f32.mrf.mxu1  ;;  %v710_v60 = vadd.f32 %v1513_v34, %v2472_v2  ;;  %v715_v34 = vadd.f32 %v1516_v7, %v2472_v2 }
 0x3fd   :  { %1871 = vtanh.f32 %v1283_v63  ;;  %v1282_v30 = vadd.f32 %v2484_v46, %v1259_v36  ;;  %v1262_v33 = vadd.f32 %v1686_v52, %v690_v54  ;;  %v1519_v54 = vadd.f32 %v2476_v39, %v2463_v19 }
 0x3fe   :  { %v1848_v13 = vpop.eup %1847  ;;  %1873 = vrcp.f32 %v782_v62  ;;  %v1214_v51 = vpop.f32.mrf.mxu1 }
 0x3ff   :  { %v2543_v8 = vpop.eup %1849  ;;  %v1325_v16 = vsub.f32 %v1848_v13, %v2324_v22  ;;  %1875 = vtanh.f32 %v1282_v30  ;;  %v1285_v35 = vadd.f32 %v2484_v46, %v1262_v33  ;;  %v1261_v11 = vadd.f32 %v1214_v51, %v685_v15 }
 0x400   :  { %v1852_v50 = vpop.eup %1851  ;;  %1877 = vrcp.f32 %v783_v31  ;;  %v1689_v43 = vpop.f32.mrf.mxu1  ;;  %v720_v4 = vadd.f32 %v1519_v54, %v2472_v2 }
 0x401   :  { %v2549_v20 = vpop.eup %1853  ;;  %v1341_v27 = vmul.f32 %v1325_v16, %v1309_v17  ;;  %v1324_v9 = vsub.f32 %v1852_v50, %v2327_v24  ;;  %1879 = vtanh.f32 %v1285_v35  ;;  %v1284_v10 = vadd.f32 %v2484_v46, %v1261_v11 }
 0x402   :  { %v1856_v58 = vpop.eup %1855  ;;  %1881 = vrcp.f32 %v784_v47  ;;  %v1264_v15 = vadd.f32 %v1689_v43, %v700_v6  ;;  %v1224_v0 = vpop.f32.mrf.mxu1  ;;  %v1315_v16 = vsub.f32 1.0, %v2549_v20 }
 0x403   :  { %v1858_v37 = vpop.eup %1857  ;;  %v1357_v62 = vadd.f32 %v1341_v27, %v2324_v22  ;;  %v1340_v17 = vmul.f32 %v1324_v9, %v1308_v57  ;;  %v1327_v25 = vsub.f32 %v1856_v58, %v2318_v32  ;;  %1883 = vtanh.f32 %v1284_v10 }
 0x404   :  { %v1860_v61 = vpop.eup %1859  ;;  %1885 = vrcp.f32 %v785_v14  ;;  %v1287_v1 = vadd.f32 %v2484_v46, %v1264_v15  ;;  %v1263_v23 = vadd.f32 %v1224_v0, %v695_v28  ;;  %v1692_v55 = vpop.f32.mrf.mxu1  ;;  %v786_v52 = vadd.f32 1.0, %v1858_v37 }
 0x405   :  { %v2563_v63 = vpop.eup %1861  ;;  %1373 = vst [vmem:[#allocation11 + $0x8] sm:$0xff] %v1357_v62  ;;  %v1356_v22 = vadd.f32 %v1340_v17, %v2327_v24  ;;  %v1343_v36 = vmul.f32 %v1327_v25, %v1311_v59  ;;  %v1326_v38 = vsub.f32 %v1860_v61, %v2321_v26  ;;  %v1266_v57 = vadd.f32 %v1692_v55, %v710_v60 }
 0x406   :  { %v1864_v31 = vpop.eup %1863  ;;  %1887 = vtanh.f32 %v1287_v1  ;;  %v1286_v19 = vadd.f32 %v2484_v46, %v1263_v23  ;;  %v1234_v39 = vpop.f32.mrf.mxu1  ;;  %v1314_v9 = vsub.f32 1.0, %v2543_v8 }
 0x407   :  { %v1866_v42 = vpop.eup %1865  ;;  %1372 = vst [vmem:[#allocation11] sm:$0xff] %v1356_v22  ;;  %v1359_v28 = vadd.f32 %v1343_v36, %v2318_v32  ;;  %v1342_v30 = vmul.f32 %v1326_v38, %v1310_v40  ;;  %v1329_v24 = vsub.f32 %v1864_v31, %v2312_v56  ;;  %v1289_v59 = vadd.f32 %v2484_v46, %v1266_v57 }
 0x408   :  { %v1868_v33 = vpop.eup %1867  ;;  %1889 = vtanh.f32 %v1286_v19  ;;  %v1265_v13 = vadd.f32 %v1234_v39, %v705_v45  ;;  %v1695_v47 = vpop.f32.mrf.mxu1 }
 0x409   :  { %v2576_v51 = vpop.eup %1869  ;;  %1375 = vst [vmem:[#allocation11 + $0x18] sm:$0xff] %v1359_v28  ;;  %v1358_v32 = vadd.f32 %v1342_v30, %v2321_v26  ;;  %v1345_v6 = vmul.f32 %v1329_v24, %v1313_v49  ;;  %v1328_v3 = vsub.f32 %v1868_v33, %v2315_v44  ;;  %1891 = vtanh.f32 %v1289_v59  ;;  %v2646_v24 = vld [vmem:[#allocation26_spill] sm:$0xff] }
 0x40a   :  { %v1872_v40 = vpop.eup %1871  ;;  %1893 = vrcp.f32 %v786_v52  ;;  %v1288_v35 = vadd.f32 %v2484_v46, %v1265_v13  ;;  %v1268_v11 = vadd.f32 %v1695_v47, %v720_v4  ;;  %v1244_v50 = vpop.f32.mrf.mxu1  ;;  %v2645_v52 = vld [vmem:[#allocation25_spill] sm:$0xff] }
 0x40b   :  { %v1874_v14 = vpop.eup %1873  ;;  %1374 = vst [vmem:[#allocation11 + $0x10] sm:$0xff] %v1358_v32  ;;  %v1361_v2 = vadd.f32 %v1345_v6, %v2312_v56  ;;  %v1344_v43 = vmul.f32 %v1328_v3, %v1312_v18  ;;  %v1331_v26 = vsub.f32 %v1872_v40, %v2306_v12  ;;  %v1267_v45 = vadd.f32 %v1244_v50, %v715_v34 }
 0x40c   :  { %v1876_v27 = vpop.eup %1875  ;;  %1895 = vtanh.f32 %v1288_v35  ;;  %v1291_v20 = vadd.f32 %v2484_v46, %v1268_v11  ;;  %v1317_v18 = vsub.f32 1.0, %v1866_v42 }
 0x40d   :  { %v1878_v10 = vpop.eup %1877  ;;  %1377 = vst [vmem:[#allocation11 + $0x28] sm:$0xff] %v1361_v2  ;;  %v1360_v58 = vadd.f32 %v1344_v43, %v2315_v44  ;;  %v1347_v7 = vmul.f32 %v1331_v26, %v1315_v16  ;;  %v1330_v15 = vsub.f32 %v1876_v27, %v2309_v5  ;;  %v1290_v56 = vadd.f32 %v2484_v46, %v1267_v45 }
 0x40e   :  { %v1880_v21 = vpop.eup %1879  ;;  %1897 = vtanh.f32 %v1291_v20  ;;  %v1316_v44 = vsub.f32 1.0, %v2563_v63  ;;  %v1318_v63 = vsub.f32 1.0, %v2576_v51  ;;  %v1320_v30 = vsub.f32 1.0, %v1878_v10  ;;  %v1905_v51 = vld [vmem:[#allocation7 + $0x78] sm:$0xff] }
 0x40f   :  { %v1882_v0 = vpop.eup %1881  ;;  %1376 = vst [vmem:[#allocation11 + $0x20] sm:$0xff] %v1360_v58  ;;  %v1363_v60 = vadd.f32 %v1347_v7, %v2306_v12  ;;  %v1346_v8 = vmul.f32 %v1330_v15, %v1314_v9  ;;  %v1333_v37 = vsub.f32 %v1880_v21, %v2300_v41  ;;  %1899 = vtanh.f32 %v1290_v56 }
 0x410   :  { %v1884_v62 = vpop.eup %1883  ;;  %v1319_v12 = vsub.f32 1.0, %v1874_v14  ;;  %v1321_v49 = vsub.f32 1.0, %v1882_v0 }
 0x411   :  { %v1886_v17 = vpop.eup %1885  ;;  %1379 = vst [vmem:[#allocation11 + $0x38] sm:$0xff] %v1363_v60  ;;  %v1362_v25 = vadd.f32 %v1346_v8, %v2309_v5  ;;  %v1349_v61 = vmul.f32 %v1333_v37, %v1317_v18  ;;  %v1332_v46 = vsub.f32 %v1884_v62, %v2303_v48 }
 0x412   :  { %v1322_v6 = vsub.f32 1.0, %v1886_v17 }
 0x413   :  { %v1888_v54 = vpop.eup %1887  ;;  %1378 = vst [vmem:[#allocation11 + $0x30] sm:$0xff] %v1362_v25  ;;  %v1365_v1 = vadd.f32 %v1349_v61, %v2300_v41  ;;  %v1348_v23 = vmul.f32 %v1332_v46, %v1316_v44 }
 0x414   :  { %v1335_v55 = vsub.f32 %v1888_v54, %v2294_v53 }
 0x415   :  { %v1890_v22 = vpop.eup %1889  ;;  %1381 = vst [vmem:[#allocation11 + $0x48] sm:$0xff] %v1365_v1  ;;  %v1364_v36 = vadd.f32 %v1348_v23, %v2303_v48 }
 0x416   :  { %v1892_v38 = vpop.eup %1891  ;;  %v1351_v57 = vmul.f32 %v1335_v55, %v1319_v12  ;;  %v1334_v5 = vsub.f32 %v1890_v22, %v2297_v29 }
 0x417   :  { %v1894_v31 = vpop.eup %1893  ;;  %1380 = vst [vmem:[#allocation11 + $0x40] sm:$0xff] %v1364_v36  ;;  %v1337_v19 = vsub.f32 %v1892_v38, %v2645_v52 }
 0x418   :  { %v1367_v41 = vadd.f32 %v1351_v57, %v2294_v53  ;;  %v1350_v39 = vmul.f32 %v1334_v5, %v1318_v63  ;;  %v1323_v47 = vsub.f32 1.0, %v1894_v31  ;;  %v1906_v53 = vld [vmem:[#allocation7 + $0x70] sm:$0xff] }
 0x419   :  { %v1896_v42 = vpop.eup %1895  ;;  %v1353_v28 = vmul.f32 %v1337_v19, %v1321_v49 }
 0x41a   :  { %1383 = vst [vmem:[#allocation11 + $0x58] sm:$0xff] %v1367_v41  ;;  %v1366_v48 = vadd.f32 %v1350_v39, %v2297_v29  ;;  %v1336_v59 = vsub.f32 %v1896_v42, %v2646_v24 }
 0x41b   :  { %v1898_v33 = vpop.eup %1897  ;;  %v1369_v13 = vadd.f32 %v1353_v28, %v2645_v52 }
 0x41c   :  { %v1900_v4 = vpop.eup %1899  ;;  %1382 = vst [vmem:[#allocation11 + $0x50] sm:$0xff] %v1366_v48  ;;  %v1352_v34 = vmul.f32 %v1336_v59, %v1320_v30  ;;  %v1339_v32 = vsub.f32 %v1898_v33, %v1905_v51 }
 0x41d   :  { %1385 = vst [vmem:[#allocation11 + $0x68] sm:$0xff] %v1369_v13  ;;  %v1338_v3 = vsub.f32 %v1900_v4, %v1906_v53 }
 0x41e   :  { %v1368_v40 = vadd.f32 %v1352_v34, %v2646_v24  ;;  %v1355_v16 = vmul.f32 %v1339_v32, %v1323_v47 }
 0x41f   :  { %v1354_v29 = vmul.f32 %v1338_v3, %v1322_v6 }
 0x420   :  { %1384 = vst [vmem:[#allocation11 + $0x60] sm:$0xff] %v1368_v40  ;;  %v1371_v35 = vadd.f32 %v1905_v51, %v1355_v16 }
 0x421   :  { %v1370_v11 = vadd.f32 %v1906_v53, %v1354_v29 }
 0x422   :  { %1387 = vst [vmem:[#allocation11 + $0x78] sm:$0xff] %v1371_v35 }
 0x423   :  { %1386 = vst [vmem:[#allocation11 + $0x70] sm:$0xff] %v1370_v11 }
 0x424   :  { %2018 = shalt.err (!%p2015_p1)
}
 0x425   :  { %1399 = dma.vmem_to_hbm [thread:$0]  %s1394_s30, 2048, %s2620_s7, [#allocation4], %s2042_s17, %s2042_s17, %s2043_s18  }
 0x426   :  { %2033 = dma.done.wait [#allocation4], 2048  }
 0x427   :  { %2034 = vsyncadd [#allocation4], 4294965248 }
 0x428   :  { %1403 = vsyncpa [#allocation3], 1 }
 0x429   :  { %1404 = vsyncpa [#allocation6], 1 }
 0x42a   :  { %1405 = vsyncpa [#allocation9], 1 }
 0x42b   :  { %1406 = vsyncpa [#allocation4], 1 }

</bundles_post_ra>
